<compile_context>
chip_gen: v7x
topology: tpu7x:2x2x1
jax: 0.10.0
libtpu: 0.0.40
codegen_flags: <defaults>
</compile_context>

<pallas_src>
import functools

import jax
import jax.numpy as jnp
from jax import lax
from jax.experimental import pallas as pl
from jax.experimental.pallas import tpu as pltpu


# ----------------------------- Pallas kernel ---------------------------------

def _leaky_relu(v):
    # PyTorch default negative_slope = 0.01; max-form (2 VALU ops).
    return jnp.maximum(v, 0.01 * v)


def _ln_normalize(v):
    # LayerNorm statistics only (biased variance, eps = 1e-5); affine applied
    # by the caller or folded into the next Linear.  One-pass stats; rsqrt on
    # the EUP slot.
    inv_n = 1.0 / v.shape[-1]
    mu = jnp.sum(v, axis=-1, keepdims=True) * inv_n
    ex2 = jnp.sum(v * v, axis=-1, keepdims=True) * inv_n
    var = jnp.maximum(ex2 - mu * mu, 0.0)
    return (v - mu) * lax.rsqrt(var + 1e-5)


def policy_mlp_kernel(
    x_ref,                          # (bt, D) f32 (raw input tile)
    w1_ref, b1_ref,                 # input_layer Linear(D,512); LN1 affine folded fwd
    w12_ref, b12_ref, g2_ref, be2_ref,  # fused [residual | hidden_1]: (512,512)
    w3_ref, b3_ref, g3_ref, be3_ref,    # hidden_layer_2: Linear(256,256)+LN(256)
    w4_ref, b4_ref,                 # hidden_layer_3 Linear(256,128); LN4 affine folded fwd
    wo_ref, bo_ref,                 # output_layer: Linear(128, n_out)
    out_ref,                        # (bt, n_out) f32
):
    f32 = jnp.float32
    bf16 = jnp.bfloat16

    # input_layer: Linear + LeakyReLU + LayerNorm (Dropout = identity in eval).
    # LN1 affine (g1, be1) is folded into w12/b12 offline.
    x = x_ref[...].astype(bf16)
    h0 = jnp.dot(x, w1_ref[...], preferred_element_type=f32) + b1_ref[...]
    h0 = _ln_normalize(_leaky_relu(h0))

    # fused residual-branch + hidden_layer_1: one 512x512 matmul, split columns.
    cat = jnp.dot(h0.astype(bf16), w12_ref[...], preferred_element_type=f32) + b12_ref[...]
    residual = cat[:, :256]
    h1 = _ln_normalize(_leaky_relu(cat[:, 256:])) * g2_ref[...] + be2_ref[...] + residual

    # hidden_layer_2 + residual add (residual = h1).
    h2 = jnp.dot(h1.astype(bf16), w3_ref[...], preferred_element_type=f32) + b3_ref[...]
    h2 = _ln_normalize(_leaky_relu(h2)) * g3_ref[...] + be3_ref[...] + h1

    # hidden_layer_3 (LN4 affine folded into wo/bo offline).
    h3 = jnp.dot(h2.astype(bf16), w4_ref[...], preferred_element_type=f32) + b4_ref[...]
    h3 = _ln_normalize(_leaky_relu(h3))

    # output_layer (unpadded n_out columns; last dim == full array dim).
    out_ref[...] = (
        jnp.dot(h3.astype(bf16), wo_ref[...], preferred_element_type=f32) + bo_ref[...]
    ).astype(out_ref.dtype)


# ------------------------------ wrapper ---------------------------------------

def _round_up(n, m):
    return (n + m - 1) // m * m


def pack_params(params):
    """Pack logical (pre-transposed x@W layout) params for the kernel.

    - wr|w2 concatenated into one (512, 512) weight, br|b2 into (1, 512).
    - LN1 affine folded into the fused weight:  W12' = g1[:,None]*W12,
      b12' = be1 @ W12 + b12  (LN1 output feeds only this matmul).
    - LN4 affine folded into the output layer:  wo' = g4[:,None]*wo,
      bo' = be4 @ wo + bo.
    - Weight matrices cast to bf16 once here; biases / remaining LN params f32.
    """
    (w1, b1, g1, be1,
     wr, br,
     w2, b2, g2, be2,
     w3, b3, g3, be3,
     w4, b4, g4, be4,
     wo, bo) = params

    w12_raw = jnp.concatenate([wr, w2], axis=1)      # (512, 512)
    b12_raw = jnp.concatenate([br, b2], axis=1)      # (1, 512)
    b12 = be1 @ w12_raw + b12_raw                    # fold LN1 beta
    w12 = g1.reshape(-1, 1) * w12_raw                # fold LN1 gamma

    bo_f = be4 @ wo + bo                             # fold LN4 beta
    wo_f = g4.reshape(-1, 1) * wo                    # fold LN4 gamma

    bf16 = jnp.bfloat16
    return (w1.astype(bf16), b1,
            w12.astype(bf16), b12, g2, be2,
            w3.astype(bf16), b3, g3, be3,
            w4.astype(bf16), b4,
            wo_f.astype(bf16), bo_f)


def multi_robot_policy_forward(x, packed, n_robots, max_actions, *, batch_tile=512):
    """x: (B, input_size) float32. Returns (B, n_robots, max_actions) float32."""
    B, D = x.shape
    n_out = n_robots * max_actions

    # Tile heuristic: single tile for B <= batch_tile (avoid splitting tiny
    # batches across sequential grid steps on single-TC chips); big batches use
    # 256-row-aligned tiles so the grid has >= 2 balanced steps (v7x megacore).
    if B <= batch_tile:
        bt = _round_up(max(B, 8), 8)
    else:
        bt = _round_up(batch_tile, 256)
    B_pad = _round_up(B, bt)

    # Only touch the input if the batch actually needs padding.
    x_in = x if B_pad == B else jnp.zeros((B_pad, D), x.dtype).at[:B].set(x)

    def full_spec(arr):
        # Whole (small) parameter resident every grid step; constant index_map
        # means Pallas does not re-DMA it between grid steps.
        return pl.BlockSpec(arr.shape, lambda i: (0, 0))

    in_specs = [pl.BlockSpec((bt, D), lambda i: (i, 0))]
    in_specs += [full_spec(p) for p in packed]
    out_specs = pl.BlockSpec((bt, n_out), lambda i: (i, 0))

    out = pl.pallas_call(
        policy_mlp_kernel,
        out_shape=jax.ShapeDtypeStruct((B_pad, n_out), jnp.float32),
        grid_spec=pl.GridSpec(
            grid=(B_pad // bt,),
            in_specs=in_specs,
            out_specs=out_specs,
        ),
        compiler_params=pltpu.CompilerParams(
            dimension_semantics=("parallel",),
        ),
    )(x_in, *packed)

    if B_pad != B:
        out = out[:B]
    return out.reshape(-1, n_robots, max_actions)


# ------------------------- deterministic init ---------------------------------

def _kaiming_normal(key, fan_in, fan_out):
    # kaiming_normal_(nonlinearity='leaky_relu', a=0) -> gain=sqrt(2), std=gain/sqrt(fan_in)
    std = jnp.sqrt(2.0 / fan_in)
    # PyTorch weight is (out, in); we store transposed (in, out) for x @ W.
    w = jax.random.normal(key, (fan_out, fan_in), dtype=jnp.float32) * std
    return w.T


def init_params(key, input_size, n_robots, max_actions):
    n_out = n_robots * max_actions
    ks = jax.random.split(key, 10)

    def lin(k, din, dout):
        return _kaiming_normal(k, din, dout), jnp.zeros((1, dout), jnp.float32)

    def ln(k, d):
        # PyTorch default init is gamma=1, beta=0; perturb slightly so the
        # LN-affine folding path is actually exercised by the numerics check.
        kg, kb = jax.random.split(k)
        g = 1.0 + 0.1 * jax.random.normal(kg, (1, d), jnp.float32)
        b = 0.05 * jax.random.normal(kb, (1, d), jnp.float32)
        return g, b

    w1, b1 = lin(ks[0], input_size, 512); g1, be1 = ln(ks[6], 512)
    wr, br = lin(ks[1], 512, 256)
    w2, b2 = lin(ks[2], 512, 256);        g2, be2 = ln(ks[7], 256)
    w3, b3 = lin(ks[3], 256, 256);        g3, be3 = ln(ks[8], 256)
    w4, b4 = lin(ks[4], 256, 128);        g4, be4 = ln(ks[9], 128)
    wo, bo = lin(ks[5], 128, n_out)

    return (w1, b1, g1, be1,
            wr, br,
            w2, b2, g2, be2,
            w3, b3, g3, be3,
            w4, b4, g4, be4,
            wo, bo)


# ----------------------------- reference (pure JAX) ----------------------------

def reference_forward(x, params, n_robots, max_actions, dot_dtype=jnp.float32):
    (w1, b1, g1, be1, wr, br, w2, b2, g2, be2,
     w3, b3, g3, be3, w4, b4, g4, be4, wo, bo) = params

    def mm(a, w):
        return jnp.dot(a.astype(dot_dtype), w.astype(dot_dtype),
                       preferred_element_type=jnp.float32)

    def ln(v, g, b):
        mu = v.mean(-1, keepdims=True)
        var = ((v - mu) ** 2).mean(-1, keepdims=True)
        return (v - mu) / jnp.sqrt(var + 1e-5) * g + b

    def lrelu(v):
        return jnp.where(v >= 0, v, 0.01 * v)

    h = ln(lrelu(mm(x, w1) + b1), g1, be1)
    r = mm(h, wr) + br
    h1 = ln(lrelu(mm(h, w2) + b2), g2, be2) + r
    h2 = ln(lrelu(mm(h1, w3) + b3), g3, be3) + h1
    h3 = ln(lrelu(mm(h2, w4) + b4), g4, be4)
    logits = mm(h3, wo) + bo
    return logits.reshape(-1, n_robots, max_actions)


# --------------------------------- main ----------------------------------------

if __name__ == "__main__":
    input_size = 64
    n_robots = 4
    max_actions = 8
    batch = 16

    key = jax.random.PRNGKey(0)
    kx, kp = jax.random.split(key)

    x = jax.random.normal(kx, (batch, input_size), dtype=jnp.float32)
    params = init_params(kp, input_size, n_robots, max_actions)
    packed = pack_params(params)

    fwd = jax.jit(functools.partial(
        multi_robot_policy_forward, n_robots=n_robots, max_actions=max_actions))
    out = fwd(x, packed)
    jax.block_until_ready(out)

    assert out.shape == (batch, n_robots, max_actions), out.shape

    # Numerics-matched reference (bf16 matmul operands, f32 accumulation &
    # elementwise).  Tolerance covers the LN-affine folding being applied to
    # bf16-rounded weights in the kernel vs unfolded weights in the reference.
    ref_bf16 = reference_forward(x, params, n_robots, max_actions,
                                 dot_dtype=jnp.bfloat16)
    err_bf16 = float(jnp.max(jnp.abs(out - ref_bf16)))
    assert jnp.allclose(out, ref_bf16, atol=3e-2, rtol=3e-2), err_bf16

    # Loose sanity bound vs full-f32 reference (documents the bf16-weight
    # precision tradeoff).
    ref_f32 = reference_forward(x, params, n_robots, max_actions)
    err_f32 = float(jnp.max(jnp.abs(out - ref_f32)))
    assert jnp.allclose(out, ref_f32, atol=3e-1, rtol=0.0), err_f32

    print("KERNEL_OK")
</pallas_src>

<mosaic_0001>
module attributes {stable_mosaic.version = 11 : i64} {
  func.func @policy_mlp_kernel(%arg0: i32, %arg1: memref<16x64xf32, #tpu.memory_space<vmem>>, %arg2: memref<64x512xbf16, #tpu.memory_space<vmem>>, %arg3: memref<1x512xf32, #tpu.memory_space<vmem>>, %arg4: memref<512x512xbf16, #tpu.memory_space<vmem>>, %arg5: memref<1x512xf32, #tpu.memory_space<vmem>>, %arg6: memref<1x256xf32, #tpu.memory_space<vmem>>, %arg7: memref<1x256xf32, #tpu.memory_space<vmem>>, %arg8: memref<256x256xbf16, #tpu.memory_space<vmem>>, %arg9: memref<1x256xf32, #tpu.memory_space<vmem>>, %arg10: memref<1x256xf32, #tpu.memory_space<vmem>>, %arg11: memref<1x256xf32, #tpu.memory_space<vmem>>, %arg12: memref<256x128xbf16, #tpu.memory_space<vmem>>, %arg13: memref<1x128xf32, #tpu.memory_space<vmem>>, %arg14: memref<128x32xbf16, #tpu.memory_space<vmem>>, %arg15: memref<1x32xf32, #tpu.memory_space<vmem>>, %arg16: memref<16x32xf32, #tpu.memory_space<vmem>>) attributes {dimension_semantics = [#tpu.dimension_semantics<parallel>], iteration_bounds = array<i64: 1>, scalar_prefetch = 0 : i64, scratch_operands = 0 : i64, tpu.core_type = #tpu.core_type<tc>, window_params = [{transform_indices = @transform_0, window_bounds = array<i64: 16, 64>}, {pipeline_mode = #tpu.pipeline_mode<synchronous>, transform_indices = @transform_1, window_bounds = array<i64: 64, 512>}, {pipeline_mode = #tpu.pipeline_mode<synchronous>, transform_indices = @transform_2, window_bounds = array<i64: 1, 512>}, {pipeline_mode = #tpu.pipeline_mode<synchronous>, transform_indices = @transform_3, window_bounds = array<i64: 512, 512>}, {pipeline_mode = #tpu.pipeline_mode<synchronous>, transform_indices = @transform_4, window_bounds = array<i64: 1, 512>}, {pipeline_mode = #tpu.pipeline_mode<synchronous>, transform_indices = @transform_5, window_bounds = array<i64: 1, 256>}, {pipeline_mode = #tpu.pipeline_mode<synchronous>, transform_indices = @transform_6, window_bounds = array<i64: 1, 256>}, {pipeline_mode = #tpu.pipeline_mode<synchronous>, transform_indices = @transform_7, window_bounds = array<i64: 256, 256>}, {pipeline_mode = #tpu.pipeline_mode<synchronous>, transform_indices = @transform_8, window_bounds = array<i64: 1, 256>}, {pipeline_mode = #tpu.pipeline_mode<synchronous>, transform_indices = @transform_9, window_bounds = array<i64: 1, 256>}, {pipeline_mode = #tpu.pipeline_mode<synchronous>, transform_indices = @transform_10, window_bounds = array<i64: 1, 256>}, {pipeline_mode = #tpu.pipeline_mode<synchronous>, transform_indices = @transform_11, window_bounds = array<i64: 256, 128>}, {pipeline_mode = #tpu.pipeline_mode<synchronous>, transform_indices = @transform_12, window_bounds = array<i64: 1, 128>}, {pipeline_mode = #tpu.pipeline_mode<synchronous>, transform_indices = @transform_13, window_bounds = array<i64: 128, 32>}, {pipeline_mode = #tpu.pipeline_mode<synchronous>, transform_indices = @transform_14, window_bounds = array<i64: 1, 32>}, {transform_indices = @transform_15, window_bounds = array<i64: 16, 32>}]} {
    %c0 = arith.constant 0 : index
    %c0_0 = arith.constant 0 : index
    %0 = vector.load %arg1[%c0, %c0_0] : memref<16x64xf32, #tpu.memory_space<vmem>>, vector<16x64xf32>
    %1 = arith.truncf %0 : vector<16x64xf32> to vector<16x64xbf16>
    %c0_1 = arith.constant 0 : index
    %c0_2 = arith.constant 0 : index
    %2 = vector.load %arg2[%c0_1, %c0_2] : memref<64x512xbf16, #tpu.memory_space<vmem>>, vector<64x512xbf16>
    %cst = arith.constant dense<0.000000e+00> : vector<16x512xf32>
    %3 = tpu.matmul %1, %2, %cst {dimension_numbers = #tpu.dot_dimension_numbers<[1], [0], [0], [1], [0, 0, 1, 1], [], []>} : vector<16x64xbf16>, vector<64x512xbf16>, vector<16x512xf32> -> vector<16x512xf32>
    %c0_3 = arith.constant 0 : index
    %c0_4 = arith.constant 0 : index
    %4 = vector.load %arg3[%c0_3, %c0_4] : memref<1x512xf32, #tpu.memory_space<vmem>>, vector<1x512xf32>
    %5 = vector.broadcast %4 : vector<1x512xf32> to vector<16x512xf32>
    %6 = arith.addf %3, %5 : vector<16x512xf32>
    %cst_5 = arith.constant 0.00999999977 : f32
    %7 = vector.broadcast %cst_5 : f32 to vector<16x512xf32>
    %8 = arith.mulf %7, %6 : vector<16x512xf32>
    %9 = arith.maximumf %6, %8 : vector<16x512xf32>
    %cst_6 = arith.constant dense<0.000000e+00> : vector<16xf32>
    %10 = vector.multi_reduction <add>, %9, %cst_6 [1] : vector<16x512xf32> to vector<16xf32>
    %11 = vector.shape_cast %10 : vector<16xf32> to vector<16x1xf32>
    %cst_7 = arith.constant 0.001953125 : f32
    %12 = vector.broadcast %cst_7 : f32 to vector<16x1xf32>
    %13 = arith.mulf %11, %12 : vector<16x1xf32>
    %14 = arith.mulf %9, %9 : vector<16x512xf32>
    %cst_8 = arith.constant dense<0.000000e+00> : vector<16xf32>
    %15 = vector.multi_reduction <add>, %14, %cst_8 [1] : vector<16x512xf32> to vector<16xf32>
    %16 = vector.shape_cast %15 : vector<16xf32> to vector<16x1xf32>
    %cst_9 = arith.constant 0.001953125 : f32
    %17 = vector.broadcast %cst_9 : f32 to vector<16x1xf32>
    %18 = arith.mulf %16, %17 : vector<16x1xf32>
    %19 = arith.mulf %13, %13 : vector<16x1xf32>
    %20 = arith.subf %18, %19 : vector<16x1xf32>
    %cst_10 = arith.constant 0.000000e+00 : f32
    %21 = vector.broadcast %cst_10 : f32 to vector<16x1xf32>
    %22 = arith.maximumf %20, %21 : vector<16x1xf32>
    %23 = vector.broadcast %13 : vector<16x1xf32> to vector<16x512xf32>
    %24 = arith.subf %9, %23 : vector<16x512xf32>
    %cst_11 = arith.constant 9.99999974E-6 : f32
    %25 = vector.broadcast %cst_11 : f32 to vector<16x1xf32>
    %26 = arith.addf %22, %25 : vector<16x1xf32>
    %27 = math.rsqrt %26 : vector<16x1xf32>
    %28 = vector.broadcast %27 : vector<16x1xf32> to vector<16x512xf32>
    %29 = arith.mulf %24, %28 : vector<16x512xf32>
    %30 = arith.truncf %29 : vector<16x512xf32> to vector<16x512xbf16>
    %c0_12 = arith.constant 0 : index
    %c0_13 = arith.constant 0 : index
    %31 = vector.load %arg4[%c0_12, %c0_13] : memref<512x512xbf16, #tpu.memory_space<vmem>>, vector<512x512xbf16>
    %cst_14 = arith.constant dense<0.000000e+00> : vector<16x512xf32>
    %32 = tpu.matmul %30, %31, %cst_14 {dimension_numbers = #tpu.dot_dimension_numbers<[1], [0], [0], [1], [0, 0, 1, 1], [], []>} : vector<16x512xbf16>, vector<512x512xbf16>, vector<16x512xf32> -> vector<16x512xf32>
    %c0_15 = arith.constant 0 : index
    %c0_16 = arith.constant 0 : index
    %33 = vector.load %arg5[%c0_15, %c0_16] : memref<1x512xf32, #tpu.memory_space<vmem>>, vector<1x512xf32>
    %34 = vector.broadcast %33 : vector<1x512xf32> to vector<16x512xf32>
    %35 = arith.addf %32, %34 : vector<16x512xf32>
    %36 = vector.extract_strided_slice %35 {offsets = [0, 0], sizes = [16, 256], strides = [1, 1]} : vector<16x512xf32> to vector<16x256xf32>
    %37 = vector.extract_strided_slice %35 {offsets = [0, 256], sizes = [16, 256], strides = [1, 1]} : vector<16x512xf32> to vector<16x256xf32>
    %cst_17 = arith.constant 0.00999999977 : f32
    %38 = vector.broadcast %cst_17 : f32 to vector<16x256xf32>
    %39 = arith.mulf %38, %37 : vector<16x256xf32>
    %40 = arith.maximumf %37, %39 : vector<16x256xf32>
    %cst_18 = arith.constant dense<0.000000e+00> : vector<16xf32>
    %41 = vector.multi_reduction <add>, %40, %cst_18 [1] : vector<16x256xf32> to vector<16xf32>
    %42 = vector.shape_cast %41 : vector<16xf32> to vector<16x1xf32>
    %cst_19 = arith.constant 3.906250e-03 : f32
    %43 = vector.broadcast %cst_19 : f32 to vector<16x1xf32>
    %44 = arith.mulf %42, %43 : vector<16x1xf32>
    %45 = arith.mulf %40, %40 : vector<16x256xf32>
    %cst_20 = arith.constant dense<0.000000e+00> : vector<16xf32>
    %46 = vector.multi_reduction <add>, %45, %cst_20 [1] : vector<16x256xf32> to vector<16xf32>
    %47 = vector.shape_cast %46 : vector<16xf32> to vector<16x1xf32>
    %cst_21 = arith.constant 3.906250e-03 : f32
    %48 = vector.broadcast %cst_21 : f32 to vector<16x1xf32>
    %49 = arith.mulf %47, %48 : vector<16x1xf32>
    %50 = arith.mulf %44, %44 : vector<16x1xf32>
    %51 = arith.subf %49, %50 : vector<16x1xf32>
    %cst_22 = arith.constant 0.000000e+00 : f32
    %52 = vector.broadcast %cst_22 : f32 to vector<16x1xf32>
    %53 = arith.maximumf %51, %52 : vector<16x1xf32>
    %54 = vector.broadcast %44 : vector<16x1xf32> to vector<16x256xf32>
    %55 = arith.subf %40, %54 : vector<16x256xf32>
    %cst_23 = arith.constant 9.99999974E-6 : f32
    %56 = vector.broadcast %cst_23 : f32 to vector<16x1xf32>
    %57 = arith.addf %53, %56 : vector<16x1xf32>
    %58 = math.rsqrt %57 : vector<16x1xf32>
    %59 = vector.broadcast %58 : vector<16x1xf32> to vector<16x256xf32>
    %60 = arith.mulf %55, %59 : vector<16x256xf32>
    %c0_24 = arith.constant 0 : index
    %c0_25 = arith.constant 0 : index
    %61 = vector.load %arg6[%c0_24, %c0_25] : memref<1x256xf32, #tpu.memory_space<vmem>>, vector<1x256xf32>
    %62 = vector.broadcast %61 : vector<1x256xf32> to vector<16x256xf32>
    %63 = arith.mulf %60, %62 : vector<16x256xf32>
    %c0_26 = arith.constant 0 : index
    %c0_27 = arith.constant 0 : index
    %64 = vector.load %arg7[%c0_26, %c0_27] : memref<1x256xf32, #tpu.memory_space<vmem>>, vector<1x256xf32>
    %65 = vector.broadcast %64 : vector<1x256xf32> to vector<16x256xf32>
    %66 = arith.addf %63, %65 : vector<16x256xf32>
    %67 = arith.addf %66, %36 : vector<16x256xf32>
    %68 = arith.truncf %67 : vector<16x256xf32> to vector<16x256xbf16>
    %c0_28 = arith.constant 0 : index
    %c0_29 = arith.constant 0 : index
    %69 = vector.load %arg8[%c0_28, %c0_29] : memref<256x256xbf16, #tpu.memory_space<vmem>>, vector<256x256xbf16>
    %cst_30 = arith.constant dense<0.000000e+00> : vector<16x256xf32>
    %70 = tpu.matmul %68, %69, %cst_30 {dimension_numbers = #tpu.dot_dimension_numbers<[1], [0], [0], [1], [0, 0, 1, 1], [], []>} : vector<16x256xbf16>, vector<256x256xbf16>, vector<16x256xf32> -> vector<16x256xf32>
    %c0_31 = arith.constant 0 : index
    %c0_32 = arith.constant 0 : index
    %71 = vector.load %arg9[%c0_31, %c0_32] : memref<1x256xf32, #tpu.memory_space<vmem>>, vector<1x256xf32>
    %72 = vector.broadcast %71 : vector<1x256xf32> to vector<16x256xf32>
    %73 = arith.addf %70, %72 : vector<16x256xf32>
    %cst_33 = arith.constant 0.00999999977 : f32
    %74 = vector.broadcast %cst_33 : f32 to vector<16x256xf32>
    %75 = arith.mulf %74, %73 : vector<16x256xf32>
    %76 = arith.maximumf %73, %75 : vector<16x256xf32>
    %cst_34 = arith.constant dense<0.000000e+00> : vector<16xf32>
    %77 = vector.multi_reduction <add>, %76, %cst_34 [1] : vector<16x256xf32> to vector<16xf32>
    %78 = vector.shape_cast %77 : vector<16xf32> to vector<16x1xf32>
    %cst_35 = arith.constant 3.906250e-03 : f32
    %79 = vector.broadcast %cst_35 : f32 to vector<16x1xf32>
    %80 = arith.mulf %78, %79 : vector<16x1xf32>
    %81 = arith.mulf %76, %76 : vector<16x256xf32>
    %cst_36 = arith.constant dense<0.000000e+00> : vector<16xf32>
    %82 = vector.multi_reduction <add>, %81, %cst_36 [1] : vector<16x256xf32> to vector<16xf32>
    %83 = vector.shape_cast %82 : vector<16xf32> to vector<16x1xf32>
    %cst_37 = arith.constant 3.906250e-03 : f32
    %84 = vector.broadcast %cst_37 : f32 to vector<16x1xf32>
    %85 = arith.mulf %83, %84 : vector<16x1xf32>
    %86 = arith.mulf %80, %80 : vector<16x1xf32>
    %87 = arith.subf %85, %86 : vector<16x1xf32>
    %cst_38 = arith.constant 0.000000e+00 : f32
    %88 = vector.broadcast %cst_38 : f32 to vector<16x1xf32>
    %89 = arith.maximumf %87, %88 : vector<16x1xf32>
    %90 = vector.broadcast %80 : vector<16x1xf32> to vector<16x256xf32>
    %91 = arith.subf %76, %90 : vector<16x256xf32>
    %cst_39 = arith.constant 9.99999974E-6 : f32
    %92 = vector.broadcast %cst_39 : f32 to vector<16x1xf32>
    %93 = arith.addf %89, %92 : vector<16x1xf32>
    %94 = math.rsqrt %93 : vector<16x1xf32>
    %95 = vector.broadcast %94 : vector<16x1xf32> to vector<16x256xf32>
    %96 = arith.mulf %91, %95 : vector<16x256xf32>
    %c0_40 = arith.constant 0 : index
    %c0_41 = arith.constant 0 : index
    %97 = vector.load %arg10[%c0_40, %c0_41] : memref<1x256xf32, #tpu.memory_space<vmem>>, vector<1x256xf32>
    %98 = vector.broadcast %97 : vector<1x256xf32> to vector<16x256xf32>
    %99 = arith.mulf %96, %98 : vector<16x256xf32>
    %c0_42 = arith.constant 0 : index
    %c0_43 = arith.constant 0 : index
    %100 = vector.load %arg11[%c0_42, %c0_43] : memref<1x256xf32, #tpu.memory_space<vmem>>, vector<1x256xf32>
    %101 = vector.broadcast %100 : vector<1x256xf32> to vector<16x256xf32>
    %102 = arith.addf %99, %101 : vector<16x256xf32>
    %103 = arith.addf %102, %67 : vector<16x256xf32>
    %104 = arith.truncf %103 : vector<16x256xf32> to vector<16x256xbf16>
    %c0_44 = arith.constant 0 : index
    %c0_45 = arith.constant 0 : index
    %105 = vector.load %arg12[%c0_44, %c0_45] : memref<256x128xbf16, #tpu.memory_space<vmem>>, vector<256x128xbf16>
    %cst_46 = arith.constant dense<0.000000e+00> : vector<16x128xf32>
    %106 = tpu.matmul %104, %105, %cst_46 {dimension_numbers = #tpu.dot_dimension_numbers<[1], [0], [0], [1], [0, 0, 1, 1], [], []>} : vector<16x256xbf16>, vector<256x128xbf16>, vector<16x128xf32> -> vector<16x128xf32>
    %c0_47 = arith.constant 0 : index
    %c0_48 = arith.constant 0 : index
    %107 = vector.load %arg13[%c0_47, %c0_48] : memref<1x128xf32, #tpu.memory_space<vmem>>, vector<1x128xf32>
    %108 = vector.broadcast %107 : vector<1x128xf32> to vector<16x128xf32>
    %109 = arith.addf %106, %108 : vector<16x128xf32>
    %cst_49 = arith.constant 0.00999999977 : f32
    %110 = vector.broadcast %cst_49 : f32 to vector<16x128xf32>
    %111 = arith.mulf %110, %109 : vector<16x128xf32>
    %112 = arith.maximumf %109, %111 : vector<16x128xf32>
    %cst_50 = arith.constant dense<0.000000e+00> : vector<16xf32>
    %113 = vector.multi_reduction <add>, %112, %cst_50 [1] : vector<16x128xf32> to vector<16xf32>
    %114 = vector.shape_cast %113 : vector<16xf32> to vector<16x1xf32>
    %cst_51 = arith.constant 7.812500e-03 : f32
    %115 = vector.broadcast %cst_51 : f32 to vector<16x1xf32>
    %116 = arith.mulf %114, %115 : vector<16x1xf32>
    %117 = arith.mulf %112, %112 : vector<16x128xf32>
    %cst_52 = arith.constant dense<0.000000e+00> : vector<16xf32>
    %118 = vector.multi_reduction <add>, %117, %cst_52 [1] : vector<16x128xf32> to vector<16xf32>
    %119 = vector.shape_cast %118 : vector<16xf32> to vector<16x1xf32>
    %cst_53 = arith.constant 7.812500e-03 : f32
    %120 = vector.broadcast %cst_53 : f32 to vector<16x1xf32>
    %121 = arith.mulf %119, %120 : vector<16x1xf32>
    %122 = arith.mulf %116, %116 : vector<16x1xf32>
    %123 = arith.subf %121, %122 : vector<16x1xf32>
    %cst_54 = arith.constant 0.000000e+00 : f32
    %124 = vector.broadcast %cst_54 : f32 to vector<16x1xf32>
    %125 = arith.maximumf %123, %124 : vector<16x1xf32>
    %126 = vector.broadcast %116 : vector<16x1xf32> to vector<16x128xf32>
    %127 = arith.subf %112, %126 : vector<16x128xf32>
    %cst_55 = arith.constant 9.99999974E-6 : f32
    %128 = vector.broadcast %cst_55 : f32 to vector<16x1xf32>
    %129 = arith.addf %125, %128 : vector<16x1xf32>
    %130 = math.rsqrt %129 : vector<16x1xf32>
    %131 = vector.broadcast %130 : vector<16x1xf32> to vector<16x128xf32>
    %132 = arith.mulf %127, %131 : vector<16x128xf32>
    %133 = arith.truncf %132 : vector<16x128xf32> to vector<16x128xbf16>
    %c0_56 = arith.constant 0 : index
    %c0_57 = arith.constant 0 : index
    %134 = vector.load %arg14[%c0_56, %c0_57] : memref<128x32xbf16, #tpu.memory_space<vmem>>, vector<128x32xbf16>
    %cst_58 = arith.constant dense<0.000000e+00> : vector<16x32xf32>
    %135 = tpu.matmul %133, %134, %cst_58 {dimension_numbers = #tpu.dot_dimension_numbers<[1], [0], [0], [1], [0, 0, 1, 1], [], []>} : vector<16x128xbf16>, vector<128x32xbf16>, vector<16x32xf32> -> vector<16x32xf32>
    %c0_59 = arith.constant 0 : index
    %c0_60 = arith.constant 0 : index
    %136 = vector.load %arg15[%c0_59, %c0_60] : memref<1x32xf32, #tpu.memory_space<vmem>>, vector<1x32xf32>
    %137 = vector.broadcast %136 : vector<1x32xf32> to vector<16x32xf32>
    %138 = arith.addf %135, %137 : vector<16x32xf32>
    %c0_61 = arith.constant 0 : index
    %c0_62 = arith.constant 0 : index
    %139 = vector.load %arg16[%c0_61, %c0_62] : memref<16x32xf32, #tpu.memory_space<vmem>>, vector<16x32xf32>
    tpu.vector_store %arg16[%c0_61, %c0_62], %138 {strides = array<i32>} : memref<16x32xf32, #tpu.memory_space<vmem>>, vector<16x32xf32>,
    return
  }
  func.func @transform_0(%arg0: i32) -> (i32, i32) {
    %c0_i32 = arith.constant 0 : i32
    %c0_i32_0 = arith.constant 0 : i32
    return %arg0, %c0_i32 : i32, i32
  }
  func.func @transform_1(%arg0: i32) -> (i32, i32) {
    %c0_i32 = arith.constant 0 : i32
    %c0_i32_0 = arith.constant 0 : i32
    %c0_i32_1 = arith.constant 0 : i32
    return %c0_i32, %c0_i32_0 : i32, i32
  }
  func.func @transform_2(%arg0: i32) -> (i32, i32) {
    %c0_i32 = arith.constant 0 : i32
    %c0_i32_0 = arith.constant 0 : i32
    %c0_i32_1 = arith.constant 0 : i32
    return %c0_i32, %c0_i32_0 : i32, i32
  }
  func.func @transform_3(%arg0: i32) -> (i32, i32) {
    %c0_i32 = arith.constant 0 : i32
    %c0_i32_0 = arith.constant 0 : i32
    %c0_i32_1 = arith.constant 0 : i32
    return %c0_i32, %c0_i32_0 : i32, i32
  }
  func.func @transform_4(%arg0: i32) -> (i32, i32) {
    %c0_i32 = arith.constant 0 : i32
    %c0_i32_0 = arith.constant 0 : i32
    %c0_i32_1 = arith.constant 0 : i32
    return %c0_i32, %c0_i32_0 : i32, i32
  }
  func.func @transform_5(%arg0: i32) -> (i32, i32) {
    %c0_i32 = arith.constant 0 : i32
    %c0_i32_0 = arith.constant 0 : i32
    %c0_i32_1 = arith.constant 0 : i32
    return %c0_i32, %c0_i32_0 : i32, i32
  }
  func.func @transform_6(%arg0: i32) -> (i32, i32) {
    %c0_i32 = arith.constant 0 : i32
    %c0_i32_0 = arith.constant 0 : i32
    %c0_i32_1 = arith.constant 0 : i32
    return %c0_i32, %c0_i32_0 : i32, i32
  }
  func.func @transform_7(%arg0: i32) -> (i32, i32) {
    %c0_i32 = arith.constant 0 : i32
    %c0_i32_0 = arith.constant 0 : i32
    %c0_i32_1 = arith.constant 0 : i32
    return %c0_i32, %c0_i32_0 : i32, i32
  }
  func.func @transform_8(%arg0: i32) -> (i32, i32) {
    %c0_i32 = arith.constant 0 : i32
    %c0_i32_0 = arith.constant 0 : i32
    %c0_i32_1 = arith.constant 0 : i32
    return %c0_i32, %c0_i32_0 : i32, i32
  }
  func.func @transform_9(%arg0: i32) -> (i32, i32) {
    %c0_i32 = arith.constant 0 : i32
    %c0_i32_0 = arith.constant 0 : i32
    %c0_i32_1 = arith.constant 0 : i32
    return %c0_i32, %c0_i32_0 : i32, i32
  }
  func.func @transform_10(%arg0: i32) -> (i32, i32) {
    %c0_i32 = arith.constant 0 : i32
    %c0_i32_0 = arith.constant 0 : i32
    %c0_i32_1 = arith.constant 0 : i32
    return %c0_i32, %c0_i32_0 : i32, i32
  }
  func.func @transform_11(%arg0: i32) -> (i32, i32) {
    %c0_i32 = arith.constant 0 : i32
    %c0_i32_0 = arith.constant 0 : i32
    %c0_i32_1 = arith.constant 0 : i32
    return %c0_i32, %c0_i32_0 : i32, i32
  }
  func.func @transform_12(%arg0: i32) -> (i32, i32) {
    %c0_i32 = arith.constant 0 : i32
    %c0_i32_0 = arith.constant 0 : i32
    %c0_i32_1 = arith.constant 0 : i32
    return %c0_i32, %c0_i32_0 : i32, i32
  }
  func.func @transform_13(%arg0: i32) -> (i32, i32) {
    %c0_i32 = arith.constant 0 : i32
    %c0_i32_0 = arith.constant 0 : i32
    %c0_i32_1 = arith.constant 0 : i32
    return %c0_i32, %c0_i32_0 : i32, i32
  }
  func.func @transform_14(%arg0: i32) -> (i32, i32) {
    %c0_i32 = arith.constant 0 : i32
    %c0_i32_0 = arith.constant 0 : i32
    %c0_i32_1 = arith.constant 0 : i32
    return %c0_i32, %c0_i32_0 : i32, i32
  }
  func.func @transform_15(%arg0: i32) -> (i32, i32) {
    %c0_i32 = arith.constant 0 : i32
    %c0_i32_0 = arith.constant 0 : i32
    return %arg0, %c0_i32 : i32, i32
  }
}

</mosaic_0001>

<bundles_post_ra>
// kernel: multi_robot_policy_forward.1
= control target key start
LH: loop header
LB: loop body
LE: loop exit
PB: predicated region body
PF: predicated region fallthrough
CT: control target
= control target key end

     0   :  { %20 = vsyncpa [#allocation3], 0  ;;  %s3162_s0 = inlined_call_operand.vmem [shape: f32[16,64], index: 0, kind: input, shape index: {}]   ;;  %s3163_s1 = inlined_call_operand.hbm [shape: bf16[64,512], index: 1, kind: input, shape index: {}]   ;;  %s3164_s2 = inlined_call_operand.vmem [shape: f32[1,512], index: 2, kind: input, shape index: {}]   ;;  %s3165_s3 = inlined_call_operand.hbm [shape: bf16[512,512], index: 3, kind: input, shape index: {}]   ;;  %s3166_s4 = inlined_call_operand.vmem [shape: f32[1,512], index: 4, kind: input, shape index: {}]   ;;  %s3167_s5 = inlined_call_operand.vmem [shape: f32[1,256], index: 5, kind: input, shape index: {}]   ;;  %s3168_s6 = inlined_call_operand.vmem [shape: f32[1,256], index: 6, kind: input, shape index: {}]   ;;  %s3169_s7 = inlined_call_operand.hbm [shape: bf16[256,256], index: 7, kind: input, shape index: {}]   ;;  %s3170_s8 = inlined_call_operand.vmem [shape: f32[1,256], index: 8, kind: input, shape index: {}]   ;;  %s3171_s9 = inlined_call_operand.vmem [shape: f32[1,256], index: 9, kind: input, shape index: {}]   ;;  %s3172_s10 = inlined_call_operand.vmem [shape: f32[1,256], index: 10, kind: input, shape index: {}]   ;;  %s3173_s11 = inlined_call_operand.hbm [shape: bf16[256,128], index: 11, kind: input, shape index: {}]   ;;  %s3174_s12 = inlined_call_operand.vmem [shape: f32[1,128], index: 12, kind: input, shape index: {}]   ;;  %s3175_s13 = inlined_call_operand.vmem [shape: bf16[128,32], index: 13, kind: input, shape index: {}]   ;;  %s3176_s14 = inlined_call_operand.vmem [shape: f32[1,32], index: 14, kind: input, shape index: {}]   ;;  %s3177_s15 = inlined_call_operand.vmem [shape: f32[16,32], index: 15, kind: output, shape index: {}]  }
   0x1   :  { %21 = vsyncpa [#allocation5], 0 }
   0x2   :  { %22 = vsyncpa [#allocation8], 0  ;;  %s2785_s18 = smov [#allocation4]   ;;  %s2786_s20 = smov [#allocation2]  }
   0x3   :  { %s44_s19 = sshll.u32 %s2785_s18, 4  ;;  %s30_s21 = sshll.u32 %s2786_s20, 4  ;;  %s45_s19 = int_to_ptr.vmem [resolvable:$true] %s44_s19  ;;  %s2878_s21 = int_to_ptr.vmem [resolvable:$true] %s30_s21 }
   0x4   :  { %s2691_s24 = scalar_lea.hbm %s3165_s3, 16384 }
   0x5   :  { %p2692_p0 = scmp.ne.s32.totalorder %s3165_s3, %s2691_s24  ;;  %p2695_p1 = scmp.lt.u32.totalorder %s2691_s24, %s3165_s3 }
   0x7   :  { %p2697_p2 = pnand %p2695_p1, %p2692_p0 }
   0x9   :  { %2700 = shalt.err (!%p2697_p2)
}
   0xa   :  { %s2701_s29 = scalar_lea.vmem %s45_s19, 16384  ;;  %p2706_p4 = scmp.lt.s32.totalorder %s45_s19, %s45_s19 }
   0xb   :  { %p2702_p3 = scmp.ne.s32.totalorder %s45_s19, %s2701_s29  ;;  %p2707_p5 = scmp.lt.s32.totalorder %s2701_s29, %s2701_s29 }
   0xd   :  { %p2708_p6 = por %p2707_p5, %p2706_p4 }
   0xf   :  { %p2709_p7 = pnand %p2708_p6, %p2702_p3 }
  0x11   :  { %2712 = shalt.err (!%p2709_p7)
}
  0x12   :  { %s2787_s30 = smov 256   ;;  %s2788_s16 = smov 16  }
  0x13   :  { %50 = dma.hbm_to_vmem [thread:$0]  %s3165_s3, 16384, %s45_s19, [#allocation5], %s2787_s30, %s2787_s30, %s2788_s16  }
  0x14   :  { %s2713_s23 = scalar_lea.hbm %s3163_s1, 2048 }
  0x15   :  { %p2714_p8 = scmp.ne.s32.totalorder %s3163_s1, %s2713_s23  ;;  %p2717_p9 = scmp.lt.u32.totalorder %s2713_s23, %s3163_s1 }
  0x17   :  { %p2719_p10 = pnand %p2717_p9, %p2714_p8 }
  0x19   :  { %2722 = shalt.err (!%p2719_p10)
}
  0x1a   :  { %s2723_s28 = scalar_lea.vmem %s2878_s21, 2048  ;;  %p2728_p12 = scmp.lt.s32.totalorder %s2878_s21, %s2878_s21 }
  0x1b   :  { %p2724_p11 = scmp.ne.s32.totalorder %s2878_s21, %s2723_s28  ;;  %p2729_p13 = scmp.lt.s32.totalorder %s2723_s28, %s2723_s28 }
  0x1d   :  { %p2730_p0 = por %p2729_p13, %p2728_p12 }
  0x1f   :  { %p2731_p1 = pnand %p2730_p0, %p2724_p11 }
  0x21   :  { %2734 = shalt.err (!%p2731_p1)
}
  0x22   :  { %36 = dma.hbm_to_vmem [thread:$0]  %s3163_s1, 2048, %s2878_s21, [#allocation3], %s2787_s30, %s2787_s30, %s2788_s16  }
  0x23   :  { %s2789_s29 = smov [#allocation6]   ;;  %s2735_s22 = scalar_lea.hbm %s3169_s7, 4096 }
  0x24   :  { %s62_s17 = sshll.u32 %s2789_s29, 4  ;;  %p2736_p2 = scmp.ne.s32.totalorder %s3169_s7, %s2735_s22  ;;  %s63_s17 = int_to_ptr.vmem [resolvable:$true] %s62_s17 }
  0x25   :  { %p2739_p3 = scmp.lt.u32.totalorder %s2735_s22, %s3169_s7 }
  0x27   :  { %p2741_p4 = pnand %p2739_p3, %p2736_p2 }
  0x29   :  { %2744 = shalt.err (!%p2741_p4)
}
  0x2a   :  { %s2745_s27 = scalar_lea.vmem %s63_s17, 4096  ;;  %p2750_p6 = scmp.lt.s32.totalorder %s63_s17, %s63_s17 }
  0x2b   :  { %p2746_p5 = scmp.ne.s32.totalorder %s63_s17, %s2745_s27  ;;  %p2751_p7 = scmp.lt.s32.totalorder %s2745_s27, %s2745_s27 }
  0x2d   :  { %p2752_p8 = por %p2751_p7, %p2750_p6 }
  0x2f   :  { %p2753_p9 = pnand %p2752_p8, %p2746_p5 }
  0x31   :  { %2756 = shalt.err (!%p2753_p9)
}
  0x32   :  { %s2790_s1 = smov 128   ;;  %s2791_s21 = smov 8  }
  0x33   :  { %68 = dma.hbm_to_vmem [thread:$0]  %s3169_s7, 4096, %s63_s17, [#allocation5], %s2790_s1, %s2790_s1, %s2791_s21  }
  0x34   :  { %s2792_s28 = smov [#allocation7]   ;;  %s2757_s18 = scalar_lea.hbm %s3173_s11, 2048 }
  0x35   :  { %s80_s3 = sshll.u32 %s2792_s28, 4  ;;  %p2758_p10 = scmp.ne.s32.totalorder %s3173_s11, %s2757_s18  ;;  %s81_s3 = int_to_ptr.vmem [resolvable:$true] %s80_s3 }
  0x36   :  { %p2761_p11 = scmp.lt.u32.totalorder %s2757_s18, %s3173_s11 }
  0x38   :  { %p2763_p12 = pnand %p2761_p11, %p2758_p10 }
  0x3a   :  { %2766 = shalt.err (!%p2763_p12)
}
  0x3b   :  { %s2767_s25 = scalar_lea.vmem %s81_s3, 2048  ;;  %p2772_p0 = scmp.lt.s32.totalorder %s81_s3, %s81_s3 }
  0x3c   :  { %p2768_p13 = scmp.ne.s32.totalorder %s81_s3, %s2767_s25  ;;  %p2773_p1 = scmp.lt.s32.totalorder %s2767_s25, %s2767_s25 }
  0x3e   :  { %p2774_p2 = por %p2773_p1, %p2772_p0 }
  0x40   :  { %p2775_p3 = pnand %p2774_p2, %p2768_p13 }
  0x42   :  { %2778 = shalt.err (!%p2775_p3)
}
  0x43   :  { %s2793_s7 = smov 64   ;;  %s2794_s17 = smov 4  }
  0x44   :  { %86 = dma.hbm_to_vmem [thread:$0]  %s3173_s11, 2048, %s81_s3, [#allocation8], %s2793_s7, %s2793_s7, %s2794_s17  }
  0x45   :  { %2779 = dma.done.wait [#allocation3], 2048  }
  0x46   :  { %2780 = vsyncadd [#allocation3], 4294965248 }
  0x47   :  { %2781 = dma.done.wait [#allocation5], 20480  }
  0x48   :  { %2782 = vsyncadd [#allocation5], 4294946816 }
  0x49   :  { %2783 = dma.done.wait [#allocation8], 2048  }
  0x4a   :  { %2784 = vsyncadd [#allocation8], 4294965248  ;;  %v2795_v0 = vmov 0   ;;  %v2387_v1 = vld [vmem:[#allocation2 + $0x4] ss:$16 sps:$4 sm:$0xff]   ;;  %v107_v18 = vld [vmem:[%s3162_s0 + $0x8] sm:$0xff]  ;;  %v127_v56 = vlaneseq }
  0x4b   :  { %263 = vmatprep.mubr.bf16.mxu0 %v2795_v0  ;;  %306 = vmatprep.mubr.bf16.mxu1 %v2795_v0  ;;  %v2389_v2 = vld [vmem:[#allocation2 + $0xc] ss:$16 sps:$4 sm:$0xff]   ;;  %v2391_v3 = vld [vmem:[#allocation2] ss:$16 sps:$4 sm:$0xff]   ;;  %v2392_v4 = vld [vmem:[#allocation2 + $0x8] ss:$16 sps:$4 sm:$0xff]  }
  0x4c   :  { %231 = vmatprep.subr.bf16.mxu0 %v2387_v1  ;;  %274 = vmatprep.subr.bf16.mxu1 %v2389_v2  ;;  %v2393_v5 = vld [vmem:[#allocation2 + $0x24] ss:$16 sps:$4 sm:$0xff]   ;;  %v2395_v6 = vld [vmem:[#allocation2 + $0x2c] ss:$16 sps:$4 sm:$0xff]   ;;  %v2397_v7 = vld [vmem:[#allocation2 + $0x20] ss:$16 sps:$4 sm:$0xff]  }
  0x4d   :  { %232 = vmatpush1.bf16.msra.mxu0 %v2391_v3  ;;  %275 = vmatpush1.bf16.msra.mxu1 %v2392_v4  ;;  %v2398_v8 = vld [vmem:[#allocation2 + $0x28] ss:$16 sps:$4 sm:$0xff]   ;;  %v2399_v9 = vld [vmem:[#allocation2 + $0x44] ss:$16 sps:$4 sm:$0xff]   ;;  %v2401_v10 = vld [vmem:[#allocation2 + $0x4c] ss:$16 sps:$4 sm:$0xff]  }
  0x4e   :  { %233 = vmatprep.subr.bf16.mxu0 %v2393_v5  ;;  %276 = vmatprep.subr.bf16.mxu1 %v2395_v6  ;;  %v2403_v11 = vld [vmem:[#allocation2 + $0x40] ss:$16 sps:$4 sm:$0xff]   ;;  %v2404_v12 = vld [vmem:[#allocation2 + $0x48] ss:$16 sps:$4 sm:$0xff]   ;;  %v2405_v13 = vld [vmem:[#allocation2 + $0x64] ss:$16 sps:$4 sm:$0xff]  }
  0x4f   :  { %v2407_v14 = vld [vmem:[#allocation2 + $0x6c] ss:$16 sps:$4 sm:$0xff]   ;;  %v2409_v15 = vld [vmem:[#allocation2 + $0x60] ss:$16 sps:$4 sm:$0xff]   ;;  %v2410_v16 = vld [vmem:[#allocation2 + $0x68] ss:$16 sps:$4 sm:$0xff]  }
  0x50   :  { %v106_v17 = vld [vmem:[%s3162_s0] sm:$0xff]  ;;  %vm227_vm0 = vcmask 523264   ;;  %v2414_v22 = vld [vmem:[#allocation4 + $0x8] ss:$16 sps:$4 sm:$0xff]   ;;  %v2416_v23 = vld [vmem:[#allocation4 + $0xc] ss:$16 sps:$4 sm:$0xff]  }
  0x51   :  { %234 = vmatpush1.bf16.msra.mxu0 %v2397_v7  ;;  %277 = vmatpush1.bf16.msra.mxu1 %v2398_v8  ;;  %v108_v19 = vpack.c.bf16 %v107_v18, %v106_v17  ;;  %v2411_v20 = vld [vmem:[#allocation4] ss:$16 sps:$4 sm:$0xff]   ;;  %v2413_v21 = vld [vmem:[#allocation4 + $0x4] ss:$16 sps:$4 sm:$0xff]   ;;  %v2422_v25 = vld [vmem:[#allocation4 + $0x2c] ss:$16 sps:$4 sm:$0xff]  }
  0x52   :  { %235 = vmatprep.subr.bf16.mxu0 %v2399_v9  ;;  %278 = vmatprep.subr.bf16.mxu1 %v2401_v10  ;;  %v2419_v24 = vld [vmem:[#allocation4 + $0x24] ss:$16 sps:$4 sm:$0xff]   ;;  %v2417_v26 = vld [vmem:[#allocation4 + $0x20] ss:$16 sps:$4 sm:$0xff]   ;;  %v2420_v27 = vld [vmem:[#allocation4 + $0x28] ss:$16 sps:$4 sm:$0xff]  }
  0x53   :  { %v2425_v28 = vld [vmem:[#allocation4 + $0x44] ss:$16 sps:$4 sm:$0xff]   ;;  %v2428_v29 = vld [vmem:[#allocation4 + $0x4c] ss:$16 sps:$4 sm:$0xff]   ;;  %v2423_v30 = vld [vmem:[#allocation4 + $0x40] ss:$16 sps:$4 sm:$0xff]  }
  0x54   :  { %v2426_v31 = vld [vmem:[#allocation4 + $0x48] ss:$16 sps:$4 sm:$0xff]   ;;  %v2431_v32 = vld [vmem:[#allocation4 + $0x64] ss:$16 sps:$4 sm:$0xff]   ;;  %v2434_v33 = vld [vmem:[#allocation4 + $0x6c] ss:$16 sps:$4 sm:$0xff]  }
  0x55   :  { %236 = vmatpush1.bf16.msra.mxu0 %v2403_v11  ;;  %279 = vmatpush1.bf16.msra.mxu1 %v2404_v12  ;;  %v2429_v34 = vld [vmem:[#allocation4 + $0x60] ss:$16 sps:$4 sm:$0xff]   ;;  %v2432_v35 = vld [vmem:[#allocation4 + $0x68] ss:$16 sps:$4 sm:$0xff]   ;;  %v2437_v36 = vld [vmem:[#allocation4 + $0x84] ss:$16 sps:$4 sm:$0xff]  }
  0x56   :  { %237 = vmatprep.subr.bf16.mxu0 %v2405_v13  ;;  %280 = vmatprep.subr.bf16.mxu1 %v2407_v14  ;;  %v2440_v37 = vld [vmem:[#allocation4 + $0x8c] ss:$16 sps:$4 sm:$0xff]   ;;  %v2435_v38 = vld [vmem:[#allocation4 + $0x80] ss:$16 sps:$4 sm:$0xff]   ;;  %v2438_v39 = vld [vmem:[#allocation4 + $0x88] ss:$16 sps:$4 sm:$0xff]  }
  0x57   :  { %v2443_v40 = vld [vmem:[#allocation4 + $0xa4] ss:$16 sps:$4 sm:$0xff]   ;;  %v2446_v41 = vld [vmem:[#allocation4 + $0xac] ss:$16 sps:$4 sm:$0xff]   ;;  %v2441_v42 = vld [vmem:[#allocation4 + $0xa0] ss:$16 sps:$4 sm:$0xff]  }
  0x58   :  { %v2444_v43 = vld [vmem:[#allocation4 + $0xa8] ss:$16 sps:$4 sm:$0xff]   ;;  %v2449_v44 = vld [vmem:[#allocation4 + $0xc4] ss:$16 sps:$4 sm:$0xff]   ;;  %v2452_v45 = vld [vmem:[#allocation4 + $0xcc] ss:$16 sps:$4 sm:$0xff]  }
  0x59   :  { %238 = vmatpush1.bf16.msra.mxu0 %v2409_v15  ;;  %281 = vmatpush1.bf16.msra.mxu1 %v2410_v16  ;;  %v2447_v46 = vld [vmem:[#allocation4 + $0xc0] ss:$16 sps:$4 sm:$0xff]   ;;  %v2450_v47 = vld [vmem:[#allocation4 + $0xc8] ss:$16 sps:$4 sm:$0xff]   ;;  %v2455_v48 = vld [vmem:[#allocation4 + $0xe4] ss:$16 sps:$4 sm:$0xff]  }
  0x5a   :  { %1185 = vmatprep.subr.bf16.mxu0 %v2413_v21  ;;  %1271 = vmatprep.subr.bf16.mxu1 %v2416_v23  ;;  %v2458_v49 = vld [vmem:[#allocation4 + $0xec] ss:$16 sps:$4 sm:$0xff]   ;;  %v2453_v50 = vld [vmem:[#allocation4 + $0xe0] ss:$16 sps:$4 sm:$0xff]   ;;  %v2456_v51 = vld [vmem:[#allocation4 + $0xe8] ss:$16 sps:$4 sm:$0xff]  }
  0x5b   :  { %v2461_v52 = vld [vmem:[#allocation4 + $0x104] ss:$16 sps:$4 sm:$0xff]   ;;  %v2464_v53 = vld [vmem:[#allocation4 + $0x10c] ss:$16 sps:$4 sm:$0xff]   ;;  %v2459_v54 = vld [vmem:[#allocation4 + $0x100] ss:$16 sps:$4 sm:$0xff]  }
  0x5c   :  { %2119 = vmatmul.mubr.msk.bf16.vlgmr.msra.gmra.mrb[0].mxu0 %vm227_vm0, %v108_v19  ;;  %2120 = vmatmul.mubr.msk.bf16.vlgmr.msra.gmra.mrb[0].mxu1 %vm227_vm0, %v108_v19  ;;  %v2462_v55 = vld [vmem:[#allocation4 + $0x108] ss:$16 sps:$4 sm:$0xff]   ;;  %v2939_v57 = vshrl.u32 %v127_v56, 7  ;;  %v125_v60 = vld [vmem:[%s3164_s2] sm:$0xf]  ;;  %vm2797_vm1 = vmmov 0  }
  0x5d   :  { %1186 = vmatpush1.bf16.msra.mxu0 %v2411_v20  ;;  %1272 = vmatpush1.bf16.msra.mxu1 %v2414_v22  ;;  %v2467_v56 = vld [vmem:[#allocation4 + $0x124] ss:$16 sps:$4 sm:$0xff]   ;;  %vm2093_vm2 = vcmask 261120  }
  0x5e   :  { %1187 = vmatprep.subr.bf16.mxu0 %v2419_v24  ;;  %1273 = vmatprep.subr.bf16.mxu1 %v2422_v25  ;;  %v2942_v58 = vsub.s32 0, %v2939_v57  ;;  %v137_v59 = vsub.s32 2, %v2939_v57  ;;  %v2949_v61 = vsub.s32 1, %v2939_v57  ;;  %v141_v62 = vsub.s32 3, %v2939_v57 }
  0x60   :  { %v130_v63 = vrot.slane %v125_v60, %v2942_v58  ;;  %v138_v0 = vrot.slane %v125_v60, %v137_v59  ;;  %v134_v1 = vrot.slane %v125_v60, %v2949_v61  ;;  %v142_v2 = vrot.slane %v125_v60, %v141_v62  ;;  %v2468_v60 = vld [vmem:[#allocation4 + $0x128] ss:$16 sps:$4 sm:$0xff]  }
  0x61   :  { %1188 = vmatpush1.bf16.msra.mxu0 %v2417_v26  ;;  %1274 = vmatpush1.bf16.msra.mxu1 %v2420_v27 }
  0x62   :  { %1189 = vmatprep.subr.bf16.mxu0 %v2425_v28  ;;  %1275 = vmatprep.subr.bf16.mxu1 %v2428_v29 }
  0x65   :  { %1190 = vmatpush1.bf16.msra.mxu0 %v2423_v30  ;;  %1276 = vmatpush1.bf16.msra.mxu1 %v2426_v31 }
  0x66   :  { %1191 = vmatprep.subr.bf16.mxu0 %v2431_v32  ;;  %1277 = vmatprep.subr.bf16.mxu1 %v2434_v33 }
  0x69   :  { %1192 = vmatpush1.bf16.msra.mxu0 %v2429_v34  ;;  %1278 = vmatpush1.bf16.msra.mxu1 %v2432_v35 }
  0x6a   :  { %1193 = vmatprep.subr.bf16.mxu0 %v2437_v36  ;;  %1279 = vmatprep.subr.bf16.mxu1 %v2440_v37 }
  0x6d   :  { %1194 = vmatpush1.bf16.msra.mxu0 %v2435_v38  ;;  %1280 = vmatpush1.bf16.msra.mxu1 %v2438_v39 }
  0x6e   :  { %1195 = vmatprep.subr.bf16.mxu0 %v2443_v40  ;;  %1281 = vmatprep.subr.bf16.mxu1 %v2446_v41 }
  0x71   :  { %1196 = vmatpush1.bf16.msra.mxu0 %v2441_v42  ;;  %1282 = vmatpush1.bf16.msra.mxu1 %v2444_v43 }
  0x72   :  { %1197 = vmatprep.subr.bf16.mxu0 %v2449_v44  ;;  %1283 = vmatprep.subr.bf16.mxu1 %v2452_v45 }
  0x75   :  { %1198 = vmatpush1.bf16.msra.mxu0 %v2447_v46  ;;  %1284 = vmatpush1.bf16.msra.mxu1 %v2450_v47 }
  0x76   :  { %1199 = vmatprep.subr.bf16.mxu0 %v2455_v48  ;;  %1285 = vmatprep.subr.bf16.mxu1 %v2458_v49 }
  0x79   :  { %1200 = vmatpush1.bf16.msra.mxu0 %v2453_v50  ;;  %1286 = vmatpush1.bf16.msra.mxu1 %v2456_v51 }
  0x7a   :  { %1201 = vmatprep.subr.bf16.mxu0 %v2461_v52  ;;  %1287 = vmatprep.subr.bf16.mxu1 %v2464_v53 }
  0x7d   :  { %1202 = vmatpush1.bf16.msra.mxu0 %v2459_v54  ;;  %1288 = vmatpush1.bf16.msra.mxu1 %v2462_v55  ;;  %v2465_v55 = vld [vmem:[#allocation4 + $0x120] ss:$16 sps:$4 sm:$0xff]  }
  0x7e   :  { %1203 = vmatprep.subr.bf16.mxu0 %v2467_v56 }
  0x81   :  { %1204 = vmatpush1.bf16.msra.mxu0 %v2465_v55 }
 0x12f   :  { %v265_v3 = vpop.f32.mrb[0].mxu0  ;;  %v308_v4 = vpop.f32.mrb[0].mxu1 }
 0x130   :  { %v266_v5 = vadd.f32 %v265_v3, %v130_v63  ;;  %v309_v6 = vadd.f32 %v308_v4, %v138_v0  ;;  %v267_v7 = vpop.f32.mrb[1].mxu0  ;;  %v310_v8 = vpop.f32.mrb[1].mxu1  ;;  %v2474_v3 = vld [vmem:[#allocation4 + $0x148] ss:$16 sps:$4 sm:$0xff]   ;;  %v2479_v4 = vld [vmem:[#allocation4 + $0x164] ss:$16 sps:$4 sm:$0xff]  }
 0x131   :  { %v268_v9 = vadd.f32 %v267_v7, %v134_v1  ;;  %v311_v10 = vadd.f32 %v310_v8, %v142_v2  ;;  %v269_v11 = vpop.f32.mrb[2].mxu0  ;;  %v312_v12 = vpop.f32.mrb[2].mxu1  ;;  %v2480_v7 = vld [vmem:[#allocation4 + $0x168] ss:$16 sps:$4 sm:$0xff]   ;;  %v2485_v8 = vld [vmem:[#allocation4 + $0x184] ss:$16 sps:$4 sm:$0xff]  }
 0x132   :  { %v317_v13 = vmul.f32 0.01, %v266_v5  ;;  %v319_v14 = vmul.f32 0.01, %v309_v6  ;;  %v270_v15 = vadd.f32 %v269_v11, %v130_v63  ;;  %v313_v16 = vadd.f32 %v312_v12, %v138_v0  ;;  %v271_v17 = vpop.f32.mrb[3].mxu0  ;;  %v314_v18 = vpop.f32.mrb[3].mxu1 }
 0x133   :  { %v318_v19 = vmul.f32 0.01, %v268_v9  ;;  %v320_v20 = vmul.f32 0.01, %v311_v10  ;;  %v272_v21 = vadd.f32 %v271_v17, %v134_v1  ;;  %v315_v22 = vadd.f32 %v314_v18, %v142_v2  ;;  %v2470_v63 = vld [vmem:[#allocation4 + $0x12c] ss:$16 sps:$4 sm:$0xff]  }
 0x134   :  { %v2958_v23 = vmax.f32 %v266_v5, %v317_v13  ;;  %v2960_v24 = vmax.f32 %v309_v6, %v319_v14  ;;  %v321_v25 = vmul.f32 0.01, %v270_v15  ;;  %v323_v26 = vmul.f32 0.01, %v313_v16  ;;  %1289 = vmatprep.subr.bf16.mxu1 %v2470_v63  ;;  %v2473_v0 = vld [vmem:[#allocation4 + $0x144] ss:$16 sps:$4 sm:$0xff]  }
 0x135   :  { %v2962_v27 = vmax.f32 %v268_v9, %v318_v19  ;;  %v2964_v28 = vmax.f32 %v311_v10, %v320_v20  ;;  %v322_v29 = vmul.f32 0.01, %v272_v21  ;;  %v324_v32 = vmul.f32 0.01, %v315_v22  ;;  %1290 = vmatpush1.bf16.msra.mxu1 %v2468_v60  ;;  %v2476_v1 = vld [vmem:[#allocation4 + $0x14c] ss:$16 sps:$4 sm:$0xff]   ;;  %1205 = vmatprep.subr.bf16.mxu0 %v2473_v0 }
 0x136   :  { %v2966_v30 = vmax.f32 %v270_v15, %v321_v25  ;;  %v2968_v31 = vmax.f32 %v313_v16, %v323_v26  ;;  %v345_v33 = vmul.f32 %v2958_v23, %v2958_v23  ;;  %v347_v38 = vmul.f32 %v2960_v24, %v2960_v24  ;;  %v2471_v2 = vld [vmem:[#allocation4 + $0x140] ss:$16 sps:$4 sm:$0xff]   ;;  %1291 = vmatprep.subr.bf16.mxu1 %v2476_v1  ;;  %v2482_v5 = vld [vmem:[#allocation4 + $0x16c] ss:$16 sps:$4 sm:$0xff]   ;;  %v2486_v11 = vld [vmem:[#allocation4 + $0x188] ss:$16 sps:$4 sm:$0xff]  }
 0x137   :  { %v2972_v34 = vmax.f32 %v272_v21, %v322_v29  ;;  %v333_v35 = vadd.f32 %v2962_v27, %v2958_v23  ;;  %v346_v36 = vmul.f32 %v2962_v27, %v2962_v27  ;;  %v2987_v43 = vmax.f32 %v315_v22, %v324_v32  ;;  %1206 = vmatpush1.bf16.msra.mxu0 %v2471_v2  ;;  %v2477_v6 = vld [vmem:[#allocation4 + $0x160] ss:$16 sps:$4 sm:$0xff]   ;;  %v2488_v9 = vld [vmem:[#allocation4 + $0x18c] ss:$16 sps:$4 sm:$0xff]   ;;  %v2491_v12 = vld [vmem:[#allocation4 + $0x1a4] ss:$16 sps:$4 sm:$0xff]  }
 0x138   :  { %v349_v37 = vmul.f32 %v2966_v30, %v2966_v30  ;;  %v348_v44 = vmul.f32 %v2964_v28, %v2964_v28  ;;  %v351_v45 = vmul.f32 %v2968_v31, %v2968_v31  ;;  %1207 = vmatprep.subr.bf16.mxu0 %v2479_v4  ;;  %v2483_v10 = vld [vmem:[#allocation4 + $0x180] ss:$16 sps:$4 sm:$0xff]   ;;  %v2494_v14 = vld [vmem:[#allocation4 + $0x1ac] ss:$16 sps:$4 sm:$0xff]   ;;  %v2492_v15 = vld [vmem:[#allocation4 + $0x1a8] ss:$16 sps:$4 sm:$0xff]  }
 0x139   :  { %v350_v39 = vmul.f32 %v2972_v34, %v2972_v34  ;;  %v334_v40 = vadd.f32 %v333_v35, %v2960_v24  ;;  %v353_v41 = vadd.f32 %v346_v36, %v345_v33  ;;  %v338_v42 = vadd.f32 %v2972_v34, %v2966_v30  ;;  %1292 = vmatpush1.bf16.msra.mxu1 %v2474_v3  ;;  %v2489_v13 = vld [vmem:[#allocation4 + $0x1a0] ss:$16 sps:$4 sm:$0xff]   ;;  %v2497_v16 = vld [vmem:[#allocation4 + $0x1c4] ss:$16 sps:$4 sm:$0xff]   ;;  %v2500_v17 = vld [vmem:[#allocation4 + $0x1cc] ss:$16 sps:$4 sm:$0xff]  }
 0x13a   :  { %v352_v53 = vmul.f32 %v2987_v43, %v2987_v43  ;;  %1293 = vmatprep.subr.bf16.mxu1 %v2482_v5  ;;  %v2495_v18 = vld [vmem:[#allocation4 + $0x1c0] ss:$16 sps:$4 sm:$0xff]   ;;  %v2498_v19 = vld [vmem:[#allocation4 + $0x1c8] ss:$16 sps:$4 sm:$0xff]   ;;  %v2503_v20 = vld [vmem:[#allocation4 + $0x1e4] ss:$16 sps:$4 sm:$0xff]  }
 0x13b   :  { %v335_v46 = vadd.f32 %v334_v40, %v2964_v28  ;;  %v354_v47 = vadd.f32 %v353_v41, %v347_v38  ;;  %v339_v48 = vadd.f32 %v338_v42, %v2968_v31  ;;  %v358_v49 = vadd.f32 %v350_v39, %v349_v37  ;;  %1208 = vmatpush1.bf16.msra.mxu0 %v2477_v6  ;;  %v2506_v21 = vld [vmem:[#allocation4 + $0x1ec] ss:$16 sps:$4 sm:$0xff]   ;;  %v2501_v22 = vld [vmem:[#allocation4 + $0x1e0] ss:$16 sps:$4 sm:$0xff]   ;;  %v2504_v25 = vld [vmem:[#allocation4 + $0x1e8] ss:$16 sps:$4 sm:$0xff]  }
 0x13c   :  { %1209 = vmatprep.subr.bf16.mxu0 %v2485_v8  ;;  %v2509_v26 = vld [vmem:[#allocation4 + $0x204] ss:$16 sps:$4 sm:$0xff]   ;;  %v2512_v29 = vld [vmem:[#allocation4 + $0x20c] ss:$16 sps:$4 sm:$0xff]  }
 0x13d   :  { %336 = vadd.xlane.f32.xlu0 %v335_v46  ;;  %v355_v50 = vadd.f32 %v354_v47, %v348_v44  ;;  %v359_v51 = vadd.f32 %v358_v49, %v351_v45  ;;  %v340_v52 = vadd.f32 %v339_v48, %v2987_v43  ;;  %1294 = vmatpush1.bf16.msra.mxu1 %v2480_v7  ;;  %v2507_v7 = vld [vmem:[#allocation4 + $0x200] ss:$16 sps:$4 sm:$0xff]  }
 0x13e   :  { %1295 = vmatprep.subr.bf16.mxu1 %v2488_v9  ;;  %v2518_v9 = vld [vmem:[#allocation4 + $0x22c] ss:$16 sps:$4 sm:$0xff]  }
 0x13f   :  { %356 = vadd.xlane.f32.xlu1 %v355_v50  ;;  %v360_v54 = vadd.f32 %v359_v51, %v352_v53  ;;  %1210 = vmatpush1.bf16.msra.mxu0 %v2483_v10  ;;  %v2513_v10 = vld [vmem:[#allocation4 + $0x220] ss:$16 sps:$4 sm:$0xff]  }
 0x140   :  { %1211 = vmatprep.subr.bf16.mxu0 %v2491_v12  ;;  %v2524_v12 = vld [vmem:[#allocation4 + $0x24c] ss:$16 sps:$4 sm:$0xff]  }
 0x141   :  { %341 = vadd.xlane.f32.xlu0 %v340_v52  ;;  %1296 = vmatpush1.bf16.msra.mxu1 %v2486_v11  ;;  %v2516_v11 = vld [vmem:[#allocation4 + $0x228] ss:$16 sps:$4 sm:$0xff]  }
 0x142   :  { %1297 = vmatprep.subr.bf16.mxu1 %v2494_v14  ;;  %v2522_v14 = vld [vmem:[#allocation4 + $0x248] ss:$16 sps:$4 sm:$0xff]  }
 0x143   :  { %361 = vadd.xlane.f32.xlu1 %v360_v54  ;;  %1212 = vmatpush1.bf16.msra.mxu0 %v2489_v13  ;;  %v2519_v13 = vld [vmem:[#allocation4 + $0x240] ss:$16 sps:$4 sm:$0xff]  }
 0x144   :  { %1213 = vmatprep.subr.bf16.mxu0 %v2497_v16  ;;  %v2530_v16 = vld [vmem:[#allocation4 + $0x26c] ss:$16 sps:$4 sm:$0xff]  }
 0x145   :  { %1298 = vmatpush1.bf16.msra.mxu1 %v2492_v15  ;;  %v2527_v15 = vld [vmem:[#allocation4 + $0x264] ss:$16 sps:$4 sm:$0xff]  }
 0x146   :  { %1299 = vmatprep.subr.bf16.mxu1 %v2500_v17  ;;  %v2525_v17 = vld [vmem:[#allocation4 + $0x260] ss:$16 sps:$4 sm:$0xff]  }
 0x147   :  { %1214 = vmatpush1.bf16.msra.mxu0 %v2495_v18  ;;  %v2528_v18 = vld [vmem:[#allocation4 + $0x268] ss:$16 sps:$4 sm:$0xff]  }
 0x148   :  { %1215 = vmatprep.subr.bf16.mxu0 %v2503_v20  ;;  %v2536_v20 = vld [vmem:[#allocation4 + $0x28c] ss:$16 sps:$4 sm:$0xff]  }
 0x149   :  { %1300 = vmatpush1.bf16.msra.mxu1 %v2498_v19  ;;  %v2533_v19 = vld [vmem:[#allocation4 + $0x284] ss:$16 sps:$4 sm:$0xff]  }
 0x14a   :  { %1301 = vmatprep.subr.bf16.mxu1 %v2506_v21  ;;  %v2531_v21 = vld [vmem:[#allocation4 + $0x280] ss:$16 sps:$4 sm:$0xff]  }
 0x14b   :  { %1216 = vmatpush1.bf16.msra.mxu0 %v2501_v22  ;;  %v2534_v22 = vld [vmem:[#allocation4 + $0x288] ss:$16 sps:$4 sm:$0xff]  }
 0x14c   :  { %1228 = vmatprep.subr.bf16.mxu0 %v2509_v26  ;;  %v2542_v26 = vld [vmem:[#allocation4 + $0x2ac] ss:$16 sps:$4 sm:$0xff]  }
 0x14d   :  { %1302 = vmatpush1.bf16.msra.mxu1 %v2504_v25  ;;  %v2539_v25 = vld [vmem:[#allocation4 + $0x2a4] ss:$16 sps:$4 sm:$0xff]  }
 0x14e   :  { %1314 = vmatprep.subr.bf16.mxu1 %v2512_v29  ;;  %v2537_v29 = vld [vmem:[#allocation4 + $0x2a0] ss:$16 sps:$4 sm:$0xff]  }
 0x1ca   :  { %v337_v32 = vpop.xlane.xlu0 %336 }
 0x1cb   :  { %v343_v33 = vmul.f32 0.001953125, %v337_v32  ;;  %v2540_v32 = vld [vmem:[#allocation4 + $0x2a8] ss:$16 sps:$4 sm:$0xff]  }
 0x1cc   :  { %v357_v35 = vpop.xlane.xlu1 %356 }
 0x1cd   :  { %v363_v36 = vmul.f32 0.001953125, %v357_v35  ;;  %v365_v37 = vmul.f32 %v343_v33, %v343_v33  ;;  %v373_v50 = vsub.f32 %v2960_v24, %v343_v33  ;;  %v372_v53 = vsub.f32 %v2962_v27, %v343_v33  ;;  %v2548_v35 = vld [vmem:[#allocation4 + $0x2cc] ss:$16 sps:$4 sm:$0xff]  }
 0x1ce   :  { %v342_v38 = vpop.xlane.xlu0 %341  ;;  %v371_v55 = vsub.f32 %v2958_v23, %v343_v33  ;;  %v374_v5 = vsub.f32 %v2964_v28, %v343_v33  ;;  %v2521_v28 = vld [vmem:[#allocation4 + $0x244] ss:$16 sps:$4 sm:$0xff]  }
 0x1cf   :  { %v367_v39 = vsub.f32 %v363_v36, %v365_v37  ;;  %v344_v40 = vmul.f32 0.001953125, %v342_v38  ;;  %v2545_v33 = vld [vmem:[#allocation4 + $0x2c4] ss:$16 sps:$4 sm:$0xff]   ;;  %v2543_v36 = vld [vmem:[#allocation4 + $0x2c0] ss:$16 sps:$4 sm:$0xff]  }
 0x1d0   :  { %v362_v41 = vpop.xlane.xlu1 %361  ;;  %v2546_v37 = vld [vmem:[#allocation4 + $0x2c8] ss:$16 sps:$4 sm:$0xff]   ;;  %v2551_v38 = vld [vmem:[#allocation4 + $0x2e4] ss:$16 sps:$4 sm:$0xff]  }
 0x1d1   :  { %v369_v42 = vmax.f32 %v367_v39, 0.0  ;;  %v364_v44 = vmul.f32 0.001953125, %v362_v41  ;;  %v366_v45 = vmul.f32 %v344_v40, %v344_v40  ;;  %v376_v54 = vsub.f32 %v2972_v34, %v344_v40  ;;  %v2510_v34 = vld [vmem:[#allocation4 + $0x208] ss:$16 sps:$4 sm:$0xff]   ;;  %v2554_v39 = vld [vmem:[#allocation4 + $0x2ec] ss:$16 sps:$4 sm:$0xff]  }
 0x1d2   :  { %v375_v56 = vsub.f32 %v2966_v30, %v344_v40  ;;  %v377_v60 = vsub.f32 %v2968_v31, %v344_v40  ;;  %v378_v1 = vsub.f32 %v2987_v43, %v344_v40  ;;  %v2515_v31 = vld [vmem:[#allocation4 + $0x224] ss:$16 sps:$4 sm:$0xff]   ;;  %v2549_v40 = vld [vmem:[#allocation4 + $0x2e0] ss:$16 sps:$4 sm:$0xff]   ;;  %v2552_v41 = vld [vmem:[#allocation4 + $0x2e8] ss:$16 sps:$4 sm:$0xff]  }
 0x1d3   :  { %v379_v46 = vadd.f32 1e-05, %v369_v42  ;;  %v368_v47 = vsub.f32 %v364_v44, %v366_v45  ;;  %v2557_v42 = vld [vmem:[#allocation4 + $0x304] ss:$16 sps:$4 sm:$0xff]   ;;  %v2560_v44 = vld [vmem:[#allocation4 + $0x30c] ss:$16 sps:$4 sm:$0xff]  }
 0x1d4   :  { %v2555_v45 = vld [vmem:[#allocation4 + $0x300] ss:$16 sps:$4 sm:$0xff]  }
 0x1d5   :  { %2675 = vrsqrt.f32 %v379_v46  ;;  %v370_v48 = vmax.f32 %v368_v47, 0.0  ;;  %v2558_v46 = vld [vmem:[#allocation4 + $0x308] ss:$16 sps:$4 sm:$0xff]   ;;  %v2563_v47 = vld [vmem:[#allocation4 + $0x324] ss:$16 sps:$4 sm:$0xff]  }
 0x1d7   :  { %v380_v49 = vadd.f32 1e-05, %v370_v48  ;;  %v2566_v48 = vld [vmem:[#allocation4 + $0x32c] ss:$16 sps:$4 sm:$0xff]  }
 0x1d9   :  { %2677 = vrsqrt.f32 %v380_v49  ;;  %v2561_v49 = vld [vmem:[#allocation4 + $0x320] ss:$16 sps:$4 sm:$0xff]  }
 0x1df   :  { %v2676_v51 = vpop.eup %2675 }
 0x1e0   :  { %v385_v52 = vmul.f32 %v2676_v51, %v373_v50  ;;  %v384_v0 = vmul.f32 %v2676_v51, %v372_v53  ;;  %v383_v3 = vmul.f32 %v2676_v51, %v371_v55  ;;  %v386_v30 = vmul.f32 %v2676_v51, %v374_v5  ;;  %v2564_v50 = vld [vmem:[#allocation4 + $0x328] ss:$16 sps:$4 sm:$0xff]   ;;  %v2569_v51 = vld [vmem:[#allocation4 + $0x344] ss:$16 sps:$4 sm:$0xff]   ;;  %v2567_v53 = vld [vmem:[#allocation4 + $0x340] ss:$16 sps:$4 sm:$0xff]  }
 0x1e1   :  { %v2575_v55 = vld [vmem:[#allocation4 + $0x364] ss:$16 sps:$4 sm:$0xff]   ;;  %v2585_v5 = vld [vmem:[#allocation4 + $0x3a0] ss:$16 sps:$4 sm:$0xff]  }
 0x1e3   :  { %v2678_v63 = vpop.eup %2677 }
 0x1e4   :  { %v388_v2 = vmul.f32 %v2678_v63, %v376_v54  ;;  %v387_v4 = vmul.f32 %v2678_v63, %v375_v56  ;;  %v389_v24 = vmul.f32 %v2678_v63, %v377_v60  ;;  %v390_v6 = vmul.f32 %v2678_v63, %v378_v1  ;;  %v2570_v54 = vld [vmem:[#allocation4 + $0x348] ss:$16 sps:$4 sm:$0xff]   ;;  %v2578_v56 = vld [vmem:[#allocation4 + $0x36c] ss:$16 sps:$4 sm:$0xff]   ;;  %v2573_v60 = vld [vmem:[#allocation4 + $0x360] ss:$16 sps:$4 sm:$0xff]  }
 0x1e5   :  { %v2576_v63 = vld [vmem:[#allocation4 + $0x368] ss:$16 sps:$4 sm:$0xff]   ;;  %v2584_v1 = vld [vmem:[#allocation4 + $0x38c] ss:$16 sps:$4 sm:$0xff]  }
 0x1e6   :  { %v392_v27 = vpack.c.bf16 %v388_v2, %v384_v0  ;;  %v391_v8 = vpack.c.bf16 %v387_v4, %v383_v3  ;;  %v3006_v23 = vpack.c.bf16 %v389_v24, %v385_v52  ;;  %v394_v43 = vpack.c.bf16 %v390_v6, %v386_v30  ;;  %v2572_v52 = vld [vmem:[#allocation4 + $0x34c] ss:$16 sps:$4 sm:$0xff]   ;;  %v2581_v0 = vld [vmem:[#allocation4 + $0x384] ss:$16 sps:$4 sm:$0xff]   ;;  %v2579_v2 = vld [vmem:[#allocation4 + $0x380] ss:$16 sps:$4 sm:$0xff]  }
 0x1e7   :  { %v2582_v3 = vld [vmem:[#allocation4 + $0x388] ss:$16 sps:$4 sm:$0xff]   ;;  %v2587_v4 = vld [vmem:[#allocation4 + $0x3a4] ss:$16 sps:$4 sm:$0xff]   ;;  %v2590_v24 = vld [vmem:[#allocation4 + $0x3ac] ss:$16 sps:$4 sm:$0xff]  }
 0x1e8   :  { %1217 = vmatprep.mubr.bf16.mxu0 %v392_v27  ;;  %1303 = vmatprep.mubr.bf16.mxu1 %v392_v27  ;;  %v2588_v6 = vld [vmem:[#allocation4 + $0x3a8] ss:$16 sps:$4 sm:$0xff]   ;;  %v2593_v27 = vld [vmem:[#allocation4 + $0x3c4] ss:$16 sps:$4 sm:$0xff]  }
 0x1e9   :  { %1218 = vmatmul.mubr.bf16.vlgmr.msra.gmra.mrb[4].mxu0 %v391_v8  ;;  %1304 = vmatmul.mubr.bf16.vlgmr.msra.gmra.mrb[4].mxu1 %v391_v8  ;;  %v2594_v8 = vld [vmem:[#allocation4 + $0x3c8] ss:$16 sps:$4 sm:$0xff]   ;;  %v2599_v30 = vld [vmem:[#allocation4 + $0x3e4] ss:$16 sps:$4 sm:$0xff]  }
 0x1ea   :  { %1229 = vmatpush1.bf16.msra.mxu0 %v2507_v7  ;;  %1315 = vmatpush1.bf16.msra.mxu1 %v2510_v34  ;;  %v2596_v7 = vld [vmem:[#allocation4 + $0x3cc] ss:$16 sps:$4 sm:$0xff]   ;;  %v2591_v34 = vld [vmem:[#allocation4 + $0x3c0] ss:$16 sps:$4 sm:$0xff]  }
 0x1eb   :  { %1260 = vmatprep.mubr.bf16.mxu0 %v394_v43  ;;  %1346 = vmatprep.mubr.bf16.mxu1 %v394_v43  ;;  %v2600_v43 = vld [vmem:[#allocation4 + $0x3e8] ss:$16 sps:$4 sm:$0xff]  }
 0x1ec   :  { %1230 = vmatprep.subr.bf16.mxu0 %v2515_v31  ;;  %1316 = vmatprep.subr.bf16.mxu1 %v2518_v9  ;;  %v2602_v31 = vld [vmem:[#allocation4 + $0x3ec] ss:$16 sps:$4 sm:$0xff]   ;;  %v2597_v9 = vld [vmem:[#allocation4 + $0x3e0] ss:$16 sps:$4 sm:$0xff]  }
 0x1ee   :  { %1231 = vmatpush1.bf16.msra.mxu0 %v2513_v10  ;;  %1317 = vmatpush1.bf16.msra.mxu1 %v2516_v11  ;;  %v2603_v10 = vld [vmem:[#allocation6] ss:$8 sps:$4 sm:$0xff]   ;;  %v2605_v11 = vld [vmem:[#allocation6 + $0x4] ss:$8 sps:$4 sm:$0xff]  }
 0x1ef   :  { %1232 = vmatprep.subr.bf16.mxu0 %v2521_v28  ;;  %1318 = vmatprep.subr.bf16.mxu1 %v2524_v12  ;;  %v2608_v28 = vld [vmem:[#allocation6 + $0x14] ss:$8 sps:$4 sm:$0xff]   ;;  %v2606_v12 = vld [vmem:[#allocation6 + $0x10] ss:$8 sps:$4 sm:$0xff]  }
 0x1f2   :  { %1233 = vmatpush1.bf16.msra.mxu0 %v2519_v13  ;;  %1319 = vmatpush1.bf16.msra.mxu1 %v2522_v14  ;;  %v2611_v13 = vld [vmem:[#allocation6 + $0x24] ss:$8 sps:$4 sm:$0xff]   ;;  %v2609_v14 = vld [vmem:[#allocation6 + $0x20] ss:$8 sps:$4 sm:$0xff]  }
 0x1f3   :  { %1234 = vmatprep.subr.bf16.mxu0 %v2527_v15  ;;  %1320 = vmatprep.subr.bf16.mxu1 %v2530_v16  ;;  %v2614_v15 = vld [vmem:[#allocation6 + $0x34] ss:$8 sps:$4 sm:$0xff]   ;;  %v2612_v16 = vld [vmem:[#allocation6 + $0x30] ss:$8 sps:$4 sm:$0xff]  }
 0x1f6   :  { %1235 = vmatpush1.bf16.msra.mxu0 %v2525_v17  ;;  %1321 = vmatpush1.bf16.msra.mxu1 %v2528_v18  ;;  %v2617_v17 = vld [vmem:[#allocation6 + $0x44] ss:$8 sps:$4 sm:$0xff]   ;;  %v2615_v18 = vld [vmem:[#allocation6 + $0x40] ss:$8 sps:$4 sm:$0xff]  }
 0x1f7   :  { %1236 = vmatprep.subr.bf16.mxu0 %v2533_v19  ;;  %1322 = vmatprep.subr.bf16.mxu1 %v2536_v20  ;;  %v2618_v19 = vld [vmem:[#allocation6 + $0x50] ss:$8 sps:$4 sm:$0xff]   ;;  %v2623_v20 = vld [vmem:[#allocation6 + $0x64] ss:$8 sps:$4 sm:$0xff]  }
 0x1fa   :  { %1237 = vmatpush1.bf16.msra.mxu0 %v2531_v21  ;;  %1323 = vmatpush1.bf16.msra.mxu1 %v2534_v22  ;;  %v2621_v21 = vld [vmem:[#allocation6 + $0x60] ss:$8 sps:$4 sm:$0xff]  }
 0x1fb   :  { %1238 = vmatprep.subr.bf16.mxu0 %v2539_v25  ;;  %1324 = vmatprep.subr.bf16.mxu1 %v2542_v26  ;;  %v3013_v22 = vld [vmem:[%s3166_s4] sm:$0xf] }
 0x1fc   :  { %v536_v25 = vrot.slane %v3013_v22, %v137_v59  ;;  %v540_v26 = vrot.slane %v3013_v22, %v141_v62 }
 0x1fe   :  { %1239 = vmatpush1.bf16.msra.mxu0 %v2537_v29  ;;  %1325 = vmatpush1.bf16.msra.mxu1 %v2540_v32 }
 0x1ff   :  { %1240 = vmatprep.subr.bf16.mxu0 %v2545_v33  ;;  %1326 = vmatprep.subr.bf16.mxu1 %v2548_v35 }
 0x202   :  { %1241 = vmatpush1.bf16.msra.mxu0 %v2543_v36  ;;  %1327 = vmatpush1.bf16.msra.mxu1 %v2546_v37 }
 0x203   :  { %1242 = vmatprep.subr.bf16.mxu0 %v2551_v38  ;;  %1328 = vmatprep.subr.bf16.mxu1 %v2554_v39 }
 0x206   :  { %1243 = vmatpush1.bf16.msra.mxu0 %v2549_v40  ;;  %1329 = vmatpush1.bf16.msra.mxu1 %v2552_v41 }
 0x207   :  { %1244 = vmatprep.subr.bf16.mxu0 %v2557_v42  ;;  %1330 = vmatprep.subr.bf16.mxu1 %v2560_v44 }
 0x20a   :  { %1245 = vmatpush1.bf16.msra.mxu0 %v2555_v45  ;;  %1331 = vmatpush1.bf16.msra.mxu1 %v2558_v46 }
 0x20b   :  { %1246 = vmatprep.subr.bf16.mxu0 %v2563_v47  ;;  %1332 = vmatprep.subr.bf16.mxu1 %v2566_v48 }
 0x20e   :  { %1247 = vmatpush1.bf16.msra.mxu0 %v2561_v49  ;;  %1333 = vmatpush1.bf16.msra.mxu1 %v2564_v50 }
 0x20f   :  { %1248 = vmatprep.subr.bf16.mxu0 %v2569_v51  ;;  %1334 = vmatprep.subr.bf16.mxu1 %v2572_v52 }
 0x212   :  { %1249 = vmatpush1.bf16.msra.mxu0 %v2567_v53  ;;  %1335 = vmatpush1.bf16.msra.mxu1 %v2570_v54 }
 0x213   :  { %1250 = vmatprep.subr.bf16.mxu0 %v2575_v55  ;;  %1336 = vmatprep.subr.bf16.mxu1 %v2578_v56 }
 0x216   :  { %1251 = vmatpush1.bf16.msra.mxu0 %v2573_v60  ;;  %1337 = vmatpush1.bf16.msra.mxu1 %v2576_v63  ;;  %v2626_v63 = vld [vmem:[#allocation6 + $0x74] ss:$8 sps:$4 sm:$0xff]  }
 0x217   :  { %1252 = vmatprep.subr.bf16.mxu0 %v2581_v0  ;;  %1338 = vmatprep.subr.bf16.mxu1 %v2584_v1  ;;  %v2624_v0 = vld [vmem:[#allocation6 + $0x70] ss:$8 sps:$4 sm:$0xff]   ;;  %v2629_v1 = vld [vmem:[#allocation6 + $0x84] ss:$8 sps:$4 sm:$0xff]  }
 0x21a   :  { %1253 = vmatpush1.bf16.msra.mxu0 %v2579_v2  ;;  %1339 = vmatpush1.bf16.msra.mxu1 %v2582_v3  ;;  %v2627_v2 = vld [vmem:[#allocation6 + $0x80] ss:$8 sps:$4 sm:$0xff]   ;;  %v2632_v3 = vld [vmem:[#allocation6 + $0x94] ss:$8 sps:$4 sm:$0xff]  }
 0x21b   :  { %1254 = vmatprep.subr.bf16.mxu0 %v2587_v4  ;;  %1340 = vmatprep.subr.bf16.mxu1 %v2590_v24  ;;  %v2630_v4 = vld [vmem:[#allocation6 + $0x90] ss:$8 sps:$4 sm:$0xff]   ;;  %v2635_v24 = vld [vmem:[#allocation6 + $0xa4] ss:$8 sps:$4 sm:$0xff]  }
 0x21e   :  { %1255 = vmatpush1.bf16.msra.mxu0 %v2585_v5  ;;  %1341 = vmatpush1.bf16.msra.mxu1 %v2588_v6  ;;  %v2633_v5 = vld [vmem:[#allocation6 + $0xa0] ss:$8 sps:$4 sm:$0xff]   ;;  %v2638_v6 = vld [vmem:[#allocation6 + $0xb4] ss:$8 sps:$4 sm:$0xff]  }
 0x21f   :  { %1256 = vmatprep.subr.bf16.mxu0 %v2593_v27  ;;  %1342 = vmatprep.subr.bf16.mxu1 %v2596_v7  ;;  %v2636_v27 = vld [vmem:[#allocation6 + $0xb0] ss:$8 sps:$4 sm:$0xff]   ;;  %v2641_v7 = vld [vmem:[#allocation6 + $0xc4] ss:$8 sps:$4 sm:$0xff]  }
 0x222   :  { %1257 = vmatpush1.bf16.msra.mxu0 %v2591_v34  ;;  %1343 = vmatpush1.bf16.msra.mxu1 %v2594_v8  ;;  %v2639_v34 = vld [vmem:[#allocation6 + $0xc0] ss:$8 sps:$4 sm:$0xff]   ;;  %v2644_v8 = vld [vmem:[#allocation6 + $0xd4] ss:$8 sps:$4 sm:$0xff]  }
 0x223   :  { %1258 = vmatprep.subr.bf16.mxu0 %v2599_v30  ;;  %1344 = vmatprep.subr.bf16.mxu1 %v2602_v31  ;;  %v2642_v30 = vld [vmem:[#allocation6 + $0xd0] ss:$8 sps:$4 sm:$0xff]   ;;  %v2645_v31 = vld [vmem:[#allocation6 + $0xe0] ss:$8 sps:$4 sm:$0xff]  }
 0x226   :  { %1259 = vmatpush1.bf16.msra.mxu0 %v2597_v9  ;;  %1345 = vmatpush1.bf16.msra.mxu1 %v2600_v43  ;;  %v2647_v9 = vld [vmem:[#allocation6 + $0xe4] ss:$8 sps:$4 sm:$0xff]   ;;  %v2650_v43 = vld [vmem:[#allocation6 + $0xf4] ss:$8 sps:$4 sm:$0xff]  }
 0x227   :  { %1645 = vmatprep.subr.bf16.mxu0 %v2605_v11 }
 0x229   :  { %1261 = vmatmul.mubr.bf16.vlgmr.msra.gmra.mrb[4].mxu0 %v3006_v23  ;;  %1347 = vmatmul.mubr.bf16.vlgmr.msra.gmra.mrb[4].mxu1 %v3006_v23  ;;  %v2620_v23 = vld [vmem:[#allocation6 + $0x54] ss:$8 sps:$4 sm:$0xff]  }
 0x22a   :  { %1646 = vmatpush1.bf16.msra.mxu0 %v2603_v10  ;;  %v2648_v10 = vld [vmem:[#allocation6 + $0xf0] ss:$8 sps:$4 sm:$0xff]  }
 0x22b   :  { %1647 = vmatprep.subr.bf16.mxu0 %v2608_v28 }
 0x22e   :  { %1648 = vmatpush1.bf16.msra.mxu0 %v2606_v12 }
 0x22f   :  { %1649 = vmatprep.subr.bf16.mxu0 %v2611_v13 }
 0x232   :  { %1650 = vmatpush1.bf16.msra.mxu0 %v2609_v14 }
 0x233   :  { %1651 = vmatprep.subr.bf16.mxu0 %v2614_v15 }
 0x236   :  { %1652 = vmatpush1.bf16.msra.mxu0 %v2612_v16 }
 0x237   :  { %1653 = vmatprep.subr.bf16.mxu0 %v2617_v17 }
 0x23a   :  { %1654 = vmatpush1.bf16.msra.mxu0 %v2615_v18 }
 0x23b   :  { %1655 = vmatprep.subr.bf16.mxu0 %v2620_v23 }
 0x23e   :  { %1656 = vmatpush1.bf16.msra.mxu0 %v2618_v19 }
 0x23f   :  { %1657 = vmatprep.subr.bf16.mxu0 %v2623_v20 }
 0x242   :  { %1658 = vmatpush1.bf16.msra.mxu0 %v2621_v21 }
 0x243   :  { %1659 = vmatprep.subr.bf16.mxu0 %v2626_v63 }
 0x246   :  { %1660 = vmatpush1.bf16.msra.mxu0 %v2624_v0 }
 0x247   :  { %1661 = vmatprep.subr.bf16.mxu0 %v2629_v1 }
 0x24a   :  { %1662 = vmatpush1.bf16.msra.mxu0 %v2627_v2 }
 0x24b   :  { %1663 = vmatprep.subr.bf16.mxu0 %v2632_v3 }
 0x24e   :  { %1664 = vmatpush1.bf16.msra.mxu0 %v2630_v4 }
 0x24f   :  { %1665 = vmatprep.subr.bf16.mxu0 %v2635_v24 }
 0x252   :  { %1666 = vmatpush1.bf16.msra.mxu0 %v2633_v5 }
 0x253   :  { %1667 = vmatprep.subr.bf16.mxu0 %v2638_v6 }
 0x256   :  { %1668 = vmatpush1.bf16.msra.mxu0 %v2636_v27 }
 0x257   :  { %1669 = vmatprep.subr.bf16.mxu0 %v2641_v7 }
 0x25a   :  { %1670 = vmatpush1.bf16.msra.mxu0 %v2639_v34 }
 0x25b   :  { %1671 = vmatprep.subr.bf16.mxu0 %v2644_v8 }
 0x25e   :  { %1672 = vmatpush1.bf16.msra.mxu0 %v2642_v30 }
 0x25f   :  { %1673 = vmatprep.subr.bf16.mxu0 %v2647_v9 }
 0x262   :  { %1674 = vmatpush1.bf16.msra.mxu0 %v2645_v31 }
 0x263   :  { %1675 = vmatprep.subr.bf16.mxu0 %v2650_v43 }
 0x266   :  { %1676 = vmatpush1.bf16.msra.mxu0 %v2648_v10 }
 0x2fc   :  { %v3021_v29 = vpop.f32.mrb[4].mxu0  ;;  %v1348_v32 = vpop.f32.mrb[4].mxu1 }
 0x2fd   :  { %v2362_v33 = vadd.f32 %v1348_v32, %v536_v25  ;;  %v3023_v35 = vpop.f32.mrb[5].mxu0  ;;  %v1350_v36 = vpop.f32.mrb[5].mxu1 }
 0x2fe   :  { %v2363_v37 = vadd.f32 %v1350_v36, %v540_v26  ;;  %v3025_v38 = vpop.f32.mrb[6].mxu0  ;;  %v1352_v39 = vpop.f32.mrb[6].mxu1  ;;  %v1419_v36 = vld [vmem:[%s3168_s6] sm:$0x3] }
 0x2ff   :  { %v1357_v40 = vmul.f32 0.01, %v2362_v33  ;;  %v2364_v41 = vadd.f32 %v1352_v39, %v536_v25  ;;  %v3027_v42 = vpop.f32.mrb[7].mxu0  ;;  %v1354_v59 = vpop.f32.mrb[7].mxu1 }
 0x300   :  { %v1358_v44 = vmul.f32 0.01, %v2363_v37  ;;  %v2365_v57 = vadd.f32 %v1354_v59, %v540_v26 }
 0x301   :  { %v3029_v45 = vmax.f32 %v2362_v33, %v1357_v40  ;;  %v1359_v62 = vmul.f32 0.01, %v2364_v41  ;;  %v1403_v33 = vld [vmem:[%s3167_s5] sm:$0x3] }
 0x302   :  { %v3031_v46 = vmax.f32 %v2363_v37, %v1358_v44  ;;  %v1360_v47 = vmul.f32 0.01, %v2365_v57  ;;  %v1408_v40 = vrot.slane %v1403_v33, %v2942_v58  ;;  %v1424_v44 = vrot.slane %v1419_v36, %v2942_v58 }
 0x303   :  { %v3033_v48 = vmax.f32 %v2364_v41, %v1359_v62  ;;  %v1373_v51 = vmul.f32 %v3029_v45, %v3029_v45  ;;  %v1412_v41 = vrot.slane %v1403_v33, %v2949_v61 }
 0x304   :  { %v3035_v49 = vmax.f32 %v2365_v57, %v1360_v47  ;;  %v1365_v50 = vadd.f32 %v3031_v46, %v3029_v45  ;;  %v1374_v52 = vmul.f32 %v3031_v46, %v3031_v46  ;;  %v1428_v57 = vrot.slane %v1419_v36, %v2949_v61  ;;  %v2651_v36 = vld [vmem:[#allocation7 + $0x40] sm:$0xff]  }
 0x305   :  { %v1375_v54 = vmul.f32 %v3033_v48, %v3033_v48  ;;  %2307 = vmatprep.subr.bf16.mxu1 %v2651_v36 }
 0x306   :  { %1366 = vadd.xlane.f32.xlu0 %v1365_v50  ;;  %v1368_v53 = vadd.f32 %v3035_v49, %v3033_v48  ;;  %v1376_v55 = vmul.f32 %v3035_v49, %v3035_v49  ;;  %v1377_v56 = vadd.f32 %v1374_v52, %v1373_v51 }
 0x308   :  { %1369 = vadd.xlane.f32.xlu1 %v1368_v53  ;;  %v1380_v60 = vadd.f32 %v1376_v55, %v1375_v54 }
 0x30a   :  { %1378 = vadd.xlane.f32.xlu0 %v1377_v56 }
 0x30c   :  { %1381 = vadd.xlane.f32.xlu1 %v1380_v60 }
 0x393   :  { %v1367_v11 = vpop.xlane.xlu0 %1366 }
 0x394   :  { %v1371_v28 = vmul.f32 0.00390625, %v1367_v11 }
 0x395   :  { %v1370_v12 = vpop.xlane.xlu1 %1369 }
 0x396   :  { %v1372_v13 = vmul.f32 0.00390625, %v1370_v12  ;;  %v1385_v15 = vmul.f32 %v1371_v28, %v1371_v28  ;;  %v1391_v37 = vsub.f32 %v3029_v45, %v1371_v28  ;;  %v1392_v39 = vsub.f32 %v3031_v46, %v1371_v28 }
 0x397   :  { %v1379_v14 = vpop.xlane.xlu0 %1378  ;;  %v528_v45 = vrot.slane %v3013_v22, %v2942_v58  ;;  %v532_v46 = vrot.slane %v3013_v22, %v2949_v61 }
 0x398   :  { %v1383_v16 = vmul.f32 0.00390625, %v1379_v14  ;;  %v1386_v23 = vmul.f32 %v1372_v13, %v1372_v13  ;;  %v1393_v62 = vsub.f32 %v3033_v48, %v1372_v13  ;;  %v1394_v47 = vsub.f32 %v3035_v49, %v1372_v13 }
 0x399   :  { %v1382_v17 = vpop.xlane.xlu1 %1381  ;;  %v2358_v48 = vadd.f32 %v3021_v29, %v528_v45  ;;  %v2359_v49 = vadd.f32 %v3023_v35, %v532_v46  ;;  %v2360_v2 = vadd.f32 %v3025_v38, %v528_v45  ;;  %v2361_v3 = vadd.f32 %v3027_v42, %v532_v46  ;;  %v1473_v35 = vld [vmem:[%s3170_s8] sm:$0x3]  ;;  %v2664_v45 = vld [vmem:[#allocation7 + $0x30] sm:$0xff]   ;;  %v2665_v46 = vld [vmem:[#allocation7 + $0x78] sm:$0xff]  }
 0x39a   :  { %v1387_v18 = vsub.f32 %v1383_v16, %v1385_v15  ;;  %v1384_v19 = vmul.f32 0.00390625, %v1382_v17  ;;  %v1478_v38 = vrot.slane %v1473_v35, %v2942_v58  ;;  %v1482_v42 = vrot.slane %v1473_v35, %v2949_v61 }
 0x39c   :  { %v1389_v20 = vmax.f32 %v1387_v18, 0.0  ;;  %v1388_v21 = vsub.f32 %v1384_v19, %v1386_v23 }
 0x39e   :  { %v1395_v25 = vadd.f32 1e-05, %v1389_v20  ;;  %v1390_v26 = vmax.f32 %v1388_v21, 0.0 }
 0x3a0   :  { %2679 = vrsqrt.f32 %v1395_v25  ;;  %v1396_v32 = vadd.f32 1e-05, %v1390_v26 }
 0x3a2   :  { %2681 = vrsqrt.f32 %v1396_v32 }
 0x3aa   :  { %v2680_v59 = vpop.eup %2679 }
 0x3ab   :  { %v1399_v50 = vmul.f32 %v2680_v59, %v1391_v37  ;;  %v1400_v51 = vmul.f32 %v2680_v59, %v1392_v39  ;;  %v2652_v37 = vld [vmem:[#allocation7] sm:$0xff]   ;;  %v2653_v39 = vld [vmem:[#allocation7 + $0x48] sm:$0xff]   ;;  %v2656_v59 = vld [vmem:[#allocation7 + $0x10] sm:$0xff]  }
 0x3ac   :  { %v2682_v52 = vpop.eup %2681  ;;  %2308 = vmatpush3.bf16.msra.mxu1 %v2652_v37 }
 0x3ad   :  { %v1401_v53 = vmul.f32 %v2682_v52, %v1393_v62  ;;  %v1402_v54 = vmul.f32 %v2682_v52, %v1394_v47  ;;  %v1416_v55 = vmul.f32 %v1412_v41, %v1400_v51  ;;  %v1415_v56 = vmul.f32 %v1408_v40, %v1399_v50  ;;  %2309 = vmatprep.subr.bf16.mxu1 %v2653_v39  ;;  %v2659_v62 = vld [vmem:[#allocation7 + $0x60] sm:$0xff]   ;;  %v2661_v50 = vld [vmem:[#allocation7 + $0x68] sm:$0xff]   ;;  %v2663_v52 = vld [vmem:[#allocation7 + $0x70] sm:$0xff]  }
 0x3ae   :  { %v2660_v47 = vld [vmem:[#allocation7 + $0x20] sm:$0xff]   ;;  %v2662_v51 = vld [vmem:[#allocation7 + $0x28] sm:$0xff]  }
 0x3af   :  { %v1418_v60 = vmul.f32 %v1412_v41, %v1402_v54  ;;  %v1432_v63 = vadd.f32 %v1428_v57, %v1416_v55  ;;  %v1417_v0 = vmul.f32 %v1408_v40, %v1401_v53  ;;  %v1431_v1 = vadd.f32 %v1424_v44, %v1415_v56  ;;  %v2654_v40 = vld [vmem:[#allocation7 + $0x8] sm:$0xff]   ;;  %v2655_v41 = vld [vmem:[#allocation7 + $0x50] sm:$0xff]   ;;  %v2666_v53 = vld [vmem:[#allocation7 + $0x38] sm:$0xff]  }
 0x3b0   :  { %2310 = vmatpush3.bf16.msra.mxu1 %v2654_v40  ;;  %v2667_v39 = vld [vmem:[%s3175_s13] sm:$0xff]   ;;  %v2796_v40 = vmov 0.0  }
 0x3b1   :  { %v1434_v4 = vadd.f32 %v1428_v57, %v1418_v60  ;;  %v1433_v24 = vadd.f32 %v1424_v44, %v1417_v0  ;;  %v3071_v5 = vadd.f32 %v2359_v49, %v1432_v63  ;;  %v3075_v6 = vadd.f32 %v2358_v48, %v1431_v1  ;;  %2311 = vmatprep.subr.bf16.mxu1 %v2655_v41  ;;  %v2657_v44 = vld [vmem:[#allocation7 + $0x58] sm:$0xff]  }
 0x3b2   :  { %v2658_v57 = vld [vmem:[#allocation7 + $0x18] sm:$0xff]  }
 0x3b3   :  { %v3073_v22 = vadd.f32 %v2361_v3, %v1434_v4  ;;  %v3077_v27 = vadd.f32 %v2360_v2, %v1433_v24 }
 0x3b4   :  { %2312 = vmatpush3.bf16.msra.mxu1 %v2656_v59 }
 0x3b5   :  { %v1440_v7 = vpack.c.bf16 %v3073_v22, %v3071_v5  ;;  %v1439_v29 = vpack.c.bf16 %v3077_v27, %v3075_v6  ;;  %2313 = vmatprep.subr.bf16.mxu1 %v2657_v44 }
 0x3b7   :  { %1677 = vmatprep.mubr.bf16.mxu0 %v1440_v7 }
 0x3b8   :  { %1678 = vmatmul.mubr.bf16.vlgmr.msra.gmra.mrb[8].mxu0 %v1439_v29  ;;  %2314 = vmatpush3.bf16.msra.mxu1 %v2658_v57 }
 0x3b9   :  { %2315 = vmatprep.subr.bf16.mxu1 %v2659_v62 }
 0x3bc   :  { %2316 = vmatpush3.bf16.msra.mxu1 %v2660_v47 }
 0x3bd   :  { %2317 = vmatprep.subr.bf16.mxu1 %v2661_v50 }
 0x3c0   :  { %2318 = vmatpush3.bf16.msra.mxu1 %v2662_v51 }
 0x3c1   :  { %2319 = vmatprep.subr.bf16.mxu1 %v2663_v52 }
 0x3c4   :  { %2320 = vmatpush3.bf16.msra.mxu1 %v2664_v45 }
 0x3c5   :  { %2321 = vmatprep.subr.bf16.mxu1 %v2665_v46 }
 0x3c8   :  { %2322 = vmatpush3.bf16.msra.mxu1 %v2666_v53  ;;  %v2668_v53 = vld [vmem:[%s3175_s13 + $0x8] sm:$0xff]  }
 0x3c9   :  { %2338 = vmatprep.subr.bf16.mxu1 %v2796_v40 }
 0x48b   :  { %v1679_v34 = vpop.f32.mrb[8].mxu0 }
 0x48c   :  { %v1680_v8 = vadd.f32 %v1679_v34, %v1478_v38  ;;  %v1681_v30 = vpop.f32.mrb[9].mxu0 }
 0x48d   :  { %v1682_v31 = vadd.f32 %v1681_v30, %v1482_v42  ;;  %v1683_v9 = vpop.f32.mrb[10].mxu0 }
 0x48e   :  { %v1688_v43 = vmul.f32 0.01, %v1680_v8  ;;  %v1684_v10 = vadd.f32 %v1683_v9, %v1478_v38  ;;  %v1685_v11 = vpop.f32.mrb[11].mxu0  ;;  %v1734_v38 = vld [vmem:[%s3171_s9] sm:$0x3] }
 0x48f   :  { %v1689_v28 = vmul.f32 0.01, %v1682_v31  ;;  %v1686_v12 = vadd.f32 %v1685_v11, %v1482_v42  ;;  %v1750_v42 = vld [vmem:[%s3172_s10] sm:$0x3]  ;;  %v1739_v30 = vrot.slane %v1734_v38, %v2942_v58 }
 0x490   :  { %v3088_v13 = vmax.f32 %v1680_v8, %v1688_v43  ;;  %v1690_v14 = vmul.f32 0.01, %v1684_v10  ;;  %v1755_v43 = vrot.slane %v1750_v42, %v2942_v58 }
 0x491   :  { %v3090_v15 = vmax.f32 %v1682_v31, %v1689_v28  ;;  %v1691_v16 = vmul.f32 0.01, %v1686_v12  ;;  %v1743_v31 = vrot.slane %v1734_v38, %v2949_v61 }
 0x492   :  { %v3092_v17 = vmax.f32 %v1684_v10, %v1690_v14  ;;  %v1704_v19 = vmul.f32 %v3088_v13, %v3088_v13  ;;  %v1759_v10 = vrot.slane %v1750_v42, %v2949_v61 }
 0x493   :  { %v3094_v18 = vmax.f32 %v1686_v12, %v1691_v16  ;;  %v1696_v23 = vadd.f32 %v3090_v15, %v3088_v13  ;;  %v1705_v20 = vmul.f32 %v3090_v15, %v3090_v15 }
 0x494   :  { %v1706_v25 = vmul.f32 %v3092_v17, %v3092_v17 }
 0x495   :  { %1697 = vadd.xlane.f32.xlu0 %v1696_v23  ;;  %v1699_v21 = vadd.f32 %v3094_v18, %v3092_v17  ;;  %v1707_v26 = vmul.f32 %v3094_v18, %v3094_v18  ;;  %v1708_v32 = vadd.f32 %v1705_v20, %v1704_v19 }
 0x497   :  { %1700 = vadd.xlane.f32.xlu1 %v1699_v21  ;;  %v1711_v33 = vadd.f32 %v1707_v26, %v1706_v25 }
 0x499   :  { %1709 = vadd.xlane.f32.xlu0 %v1708_v32 }
 0x49b   :  { %1712 = vadd.xlane.f32.xlu1 %v1711_v33 }
 0x522   :  { %v1698_v54 = vpop.xlane.xlu0 %1697 }
 0x523   :  { %v1702_v55 = vmul.f32 0.00390625, %v1698_v54  ;;  %v2669_v54 = vld [vmem:[%s3175_s13 + $0x10] sm:$0xff]  }
 0x524   :  { %v1701_v56 = vpop.xlane.xlu1 %1700 }
 0x525   :  { %v1703_v60 = vmul.f32 0.00390625, %v1701_v56  ;;  %v1716_v0 = vmul.f32 %v1702_v55, %v1702_v55  ;;  %v1722_v34 = vsub.f32 %v3088_v13, %v1702_v55  ;;  %v1723_v8 = vsub.f32 %v3090_v15, %v1702_v55  ;;  %v2670_v55 = vld [vmem:[%s3175_s13 + $0x18] sm:$0xff]   ;;  %v2671_v56 = vld [vmem:[%s3175_s13 + $0x20] sm:$0xff]  }
 0x526   :  { %v1710_v63 = vpop.xlane.xlu0 %1709 }
 0x527   :  { %v1714_v1 = vmul.f32 0.00390625, %v1710_v63  ;;  %v1717_v2 = vmul.f32 %v1703_v60, %v1703_v60  ;;  %v1724_v11 = vsub.f32 %v3092_v17, %v1703_v60  ;;  %v1725_v28 = vsub.f32 %v3094_v18, %v1703_v60  ;;  %v2672_v60 = vld [vmem:[%s3175_s13 + $0x28] sm:$0xff]   ;;  %v2673_v63 = vld [vmem:[%s3175_s13 + $0x30] sm:$0xff]  }
 0x528   :  { %v1713_v48 = vpop.xlane.xlu1 %1712 }
 0x529   :  { %v1718_v49 = vsub.f32 %v1714_v1, %v1716_v0  ;;  %v1715_v3 = vmul.f32 0.00390625, %v1713_v48  ;;  %v2674_v0 = vld [vmem:[%s3175_s13 + $0x38] sm:$0xff]  }
 0x52b   :  { %v1720_v4 = vmax.f32 %v1718_v49, 0.0  ;;  %v1719_v24 = vsub.f32 %v1715_v3, %v1717_v2 }
 0x52d   :  { %v1726_v7 = vadd.f32 1e-05, %v1720_v4  ;;  %v1721_v29 = vmax.f32 %v1719_v24, 0.0 }
 0x52f   :  { %2683 = vrsqrt.f32 %v1726_v7  ;;  %v1727_v35 = vadd.f32 1e-05, %v1721_v29 }
 0x531   :  { %2685 = vrsqrt.f32 %v1727_v35 }
 0x539   :  { %v2684_v9 = vpop.eup %2683 }
 0x53a   :  { %v1730_v12 = vmul.f32 %v2684_v9, %v1722_v34  ;;  %v1731_v14 = vmul.f32 %v2684_v9, %v1723_v8 }
 0x53b   :  { %v2686_v16 = vpop.eup %2685 }
 0x53c   :  { %v1732_v23 = vmul.f32 %v2686_v16, %v1724_v11  ;;  %v1733_v13 = vmul.f32 %v2686_v16, %v1725_v28  ;;  %v1747_v19 = vmul.f32 %v1743_v31, %v1731_v14  ;;  %v1746_v15 = vmul.f32 %v1739_v30, %v1730_v12  ;;  %v2298_v16 = vld [vmem:[%s3176_s14] ss:$0 sm:$0xff] }
 0x53e   :  { %v1749_v20 = vmul.f32 %v1743_v31, %v1733_v13  ;;  %v1763_v21 = vadd.f32 %v1759_v10, %v1747_v19  ;;  %v1748_v25 = vmul.f32 %v1739_v30, %v1732_v23  ;;  %v1762_v26 = vadd.f32 %v1755_v43, %v1746_v15 }
 0x540   :  { %v1765_v32 = vadd.f32 %v1759_v10, %v1749_v20  ;;  %v1764_v33 = vadd.f32 %v1755_v43, %v1748_v25  ;;  %v1767_v58 = vadd.f32 %v1763_v21, %v3071_v5  ;;  %v1766_v17 = vadd.f32 %v1762_v26, %v3075_v6  ;;  %v2281_v5 = vld [vmem:[%s3174_s12] ss:$0 sm:$0xff] }
 0x542   :  { %v1769_v61 = vadd.f32 %v1765_v32, %v3073_v22  ;;  %v1768_v18 = vadd.f32 %v1764_v33, %v3077_v27 }
 0x544   :  { %v1771_v36 = vpack.c.bf16 %v1769_v61, %v1767_v58  ;;  %v1770_v37 = vpack.c.bf16 %v1768_v18, %v1766_v17 }
 0x546   :  { %1939 = vmatprep.mubr.bf16.mxu1 %v1771_v36 }
 0x547   :  { %1940 = vmatmul.mubr.bf16.vlgmr.msra.gmra.mrb[8].mxu1 %v1770_v37 }
 0x548   :  { %2339 = vmatpush3.bf16.msra.mxu1 %v2667_v39  ;;  %2354 = vmatprep.mubr.msk.bf16.mxu1 %vm2797_vm1, %v2796_v40 }
 0x549   :  { %2340 = vmatprep.subr.bf16.mxu1 %v2796_v40 }
 0x54c   :  { %2341 = vmatpush3.bf16.msra.mxu1 %v2668_v53 }
 0x54d   :  { %2342 = vmatprep.subr.bf16.mxu1 %v2796_v40 }
 0x550   :  { %2343 = vmatpush3.bf16.msra.mxu1 %v2669_v54 }
 0x551   :  { %2344 = vmatprep.subr.bf16.mxu1 %v2796_v40 }
 0x554   :  { %2345 = vmatpush3.bf16.msra.mxu1 %v2670_v55 }
 0x555   :  { %2346 = vmatprep.subr.bf16.mxu1 %v2796_v40 }
 0x558   :  { %2347 = vmatpush3.bf16.msra.mxu1 %v2671_v56 }
 0x559   :  { %2348 = vmatprep.subr.bf16.mxu1 %v2796_v40 }
 0x55c   :  { %2349 = vmatpush3.bf16.msra.mxu1 %v2672_v60 }
 0x55d   :  { %2350 = vmatprep.subr.bf16.mxu1 %v2796_v40 }
 0x560   :  { %2351 = vmatpush3.bf16.msra.mxu1 %v2673_v63 }
 0x561   :  { %2352 = vmatprep.subr.bf16.mxu1 %v2796_v40 }
 0x564   :  { %2353 = vmatpush3.bf16.msra.mxu1 %v2674_v0 }
 0x61a   :  { %v2323_v41 = vpop.f32.mrb[8].mxu1 }
 0x61b   :  { %v2324_v22 = vpop.f32.mrb[9].mxu1 }
 0x61c   :  { %v2325_v6 = vadd.f32 %v2324_v22, %v2323_v41  ;;  %v2326_v27 = vpop.f32.mrb[10].mxu1 }
 0x61d   :  { %v2327_v59 = vpop.f32.mrb[11].mxu1 }
 0x61e   :  { %v1942_v44 = vadd.f32 %v2325_v6, %v2281_v5  ;;  %v2328_v57 = vadd.f32 %v2327_v59, %v2326_v27 }
 0x620   :  { %v1948_v62 = vmul.f32 0.01, %v1942_v44  ;;  %v1945_v47 = vadd.f32 %v2328_v57, %v2281_v5 }
 0x622   :  { %v1949_v50 = vmul.f32 0.01, %v1945_v47  ;;  %v1950_v51 = vmax.f32 %v1942_v44, %v1948_v62 }
 0x624   :  { %1952 = vadd.xlane.f32.xlu0 %v1950_v51  ;;  %v1951_v52 = vmax.f32 %v1945_v47, %v1949_v50  ;;  %v1958_v45 = vmul.f32 %v1950_v51, %v1950_v51 }
 0x626   :  { %1954 = vadd.xlane.f32.xlu1 %v1951_v52  ;;  %v1959_v46 = vmul.f32 %v1951_v52, %v1951_v52 }
 0x628   :  { %1960 = vadd.xlane.f32.xlu0 %v1958_v45 }
 0x62a   :  { %1962 = vadd.xlane.f32.xlu1 %v1959_v46 }
 0x6b1   :  { %v1953_v1 = vpop.xlane.xlu0 %1952 }
 0x6b2   :  { %v1956_v48 = vmul.f32 0.0078125, %v1953_v1 }
 0x6b3   :  { %v1955_v49 = vpop.xlane.xlu1 %1954 }
 0x6b4   :  { %v1957_v2 = vmul.f32 0.0078125, %v1955_v49  ;;  %v1966_v4 = vmul.f32 %v1956_v48, %v1956_v48  ;;  %v1972_v43 = vsub.f32 %v1950_v51, %v1956_v48 }
 0x6b5   :  { %v1961_v3 = vpop.xlane.xlu0 %1960 }
 0x6b6   :  { %v1964_v24 = vmul.f32 0.0078125, %v1961_v3  ;;  %v1967_v29 = vmul.f32 %v1957_v2, %v1957_v2  ;;  %v1973_v10 = vsub.f32 %v1951_v52, %v1957_v2 }
 0x6b7   :  { %v1963_v7 = vpop.xlane.xlu1 %1962 }
 0x6b8   :  { %v1968_v35 = vsub.f32 %v1964_v24, %v1966_v4  ;;  %v1965_v38 = vmul.f32 0.0078125, %v1963_v7 }
 0x6ba   :  { %v1970_v42 = vmax.f32 %v1968_v35, 0.0  ;;  %v1969_v34 = vsub.f32 %v1965_v38, %v1967_v29 }
 0x6bc   :  { %v1974_v8 = vadd.f32 1e-05, %v1970_v42  ;;  %v1971_v30 = vmax.f32 %v1969_v34, 0.0 }
 0x6be   :  { %2687 = vrsqrt.f32 %v1974_v8  ;;  %v1975_v31 = vadd.f32 1e-05, %v1971_v30 }
 0x6c0   :  { %2689 = vrsqrt.f32 %v1975_v31 }
 0x6c8   :  { %v2688_v9 = vpop.eup %2687 }
 0x6c9   :  { %v1978_v28 = vmul.f32 %v2688_v9, %v1972_v43 }
 0x6ca   :  { %v2690_v11 = vpop.eup %2689 }
 0x6cb   :  { %v1979_v12 = vmul.f32 %v2690_v11, %v1973_v10 }
 0x6cd   :  { %v1980_v14 = vpack.c.bf16 %v1979_v12, %v1978_v28 }
 0x6cf   :  { %2355 = vmatmul.mubr.bf16.vlgmr.msra.gmra.mrb[12].mxu1 %v1980_v14 }
 0x7a2   :  { %v2086_v23 = vpop.f32.mrb[12].mxu1 }
 0x7a3   :  { %v2087_v13 = vadd.f32 %v2298_v16, %v2086_v23  ;;  %v2356_v19 = vpop.f32.mrb[13].mxu1 }
 0x7a4   :  { %v2089_v15 = vpop.f32.mrb[14].mxu1 }
 0x7a5   :  { %2094 = vst.msk [vmem:[%s3177_s15] sm:$0xff] %vm2093_vm2, %v2087_v13  ;;  %v2090_v20 = vadd.f32 %v2298_v16, %v2089_v15  ;;  %v2357_v21 = vpop.f32.mrb[15].mxu1 }
 0x7a7   :  { %2095 = vst.msk [vmem:[%s3177_s15 + $0x8] sm:$0xff] %vm2093_vm2, %v2090_v20 }
 0x7a8   :  { %2100 = vsyncpa [#allocation3], 1 }
 0x7a9   :  { %2101 = vsyncpa [#allocation5], 1 }
 0x7aa   :  { %2102 = vsyncpa [#allocation8], 1 }

</bundles_post_ra>
